<compile_context>
chip_gen: v6e
topology: v6e:2x2x1
jax: 0.10.0
libtpu: 0.0.40
codegen_flags: <defaults>
</compile_context>

<pallas_src>
import math

import jax
import jax.numpy as jnp
import numpy as np
from jax.experimental import pallas as pl
from jax.experimental.pallas import tpu as pltpu

HIDDEN = 128          # fixed by the module definition
LANE = 128            # TPU lane width
SUBLANE_PACK = 16     # bf16 sublane packing granularity for batch tiles
DEFAULT_TILE_B = 512  # batch tile (amortizes per-step overhead; fits VMEM)


def _round_up(x, m):
    return (x + m - 1) // m * m


# ----------------------------- Pallas kernel ------------------------------ #
def _network_kernel(x_ref, w1_ref, b1_ref, wh_ref, bh_ref, wq_ref, bq_ref,
                    msum_ref, bc2_ref, msup_ref, o_ref):
    cdt = w1_ref.dtype                      # MXU operand dtype (bf16 or f32)

    x = x_ref[...]                          # already in matmul dtype (streamed)

    # feature = ReLU(x @ W1 + b1)
    feat = jnp.dot(x, w1_ref[...], preferred_element_type=jnp.float32)
    feat = jnp.maximum(feat + b1_ref[...], 0.0)                   # (TB, 128)

    # advantage- and value-hidden NoisyLinears fused into one (128,256) matmul
    hid = jnp.dot(feat.astype(cdt), wh_ref[...],
                  preferred_element_type=jnp.float32)
    hid = jnp.maximum(hid + bh_ref[...], 0.0)                     # (TB, 256)

    # output NoisyLinears + dueling combine folded into one matmul:
    #   logits[:, a*A+z] = value_z + adv_{a,z} - mean_{a'} adv_{a',z}
    logits = jnp.dot(hid.astype(cdt), wq_ref[...],
                     preferred_element_type=jnp.float32) + bq_ref[...]  # (TB,DP)

    # per-action softmax over atoms (row-global max; padded lanes hold -1e30)
    m = jnp.max(logits, axis=-1, keepdims=True)                   # (TB, 1)
    e = jnp.exp(logits - m)                                       # (TB, DP) f32
    denom = jnp.dot(e.astype(cdt), msum_ref[...],
                    preferred_element_type=jnp.float32)           # (TB, out_pad)
    # guard: a fully underflowed segment gives denom==0; keep rden finite so
    # 0 * rden stays 0 (clamped to 0.001 below) instead of NaN.
    denom = jnp.maximum(denom, 1e-12)
    rden = pl.reciprocal(denom, approx=True)
    rden_b = jnp.dot(rden.astype(cdt), bc2_ref[...],
                     preferred_element_type=jnp.float32)          # (TB, DP)
    dist = jnp.maximum(e * rden_b, 0.001)                         # clamp(min=.001)

    # Q(s, a) = sum_z dist_{a,z} * support_z  ->  lane-dense (TB, 128) output
    o_ref[...] = jnp.dot(dist.astype(cdt), msup_ref[...],
                         preferred_element_type=jnp.float32)


# ------------------------------- wrapper ----------------------------------- #
def network_forward(x, params, support, out_dim, atom_size, *,
                    matmul_dtype=jnp.bfloat16, tile_b=DEFAULT_TILE_B,
                    single_buffer_residents=True):
    (w1, b1, wah, bah, wvh, bvh, wadv, badv, wval, bval) = params
    batch, in_dim = x.shape
    f32 = jnp.float32

    D = out_dim * atom_size
    in_pad = _round_up(in_dim, LANE)
    dp = _round_up(D, LANE)
    out_pad = _round_up(out_dim, LANE)

    # --- batch tiling: divisor-aware tile size (small padding waste), tile a
    #     multiple of 16 (bf16 sublane packing), and >= 2 grid steps when the
    #     batch allows so both v7x TensorCores get work.
    n_tiles = max(pl.cdiv(batch, tile_b), 2 if batch > SUBLANE_PACK else 1)
    tb = _round_up(pl.cdiv(batch, n_tiles), SUBLANE_PACK)
    b_pad = _round_up(batch, tb)
    grid = (b_pad // tb,)

    # x is the only streamed operand: pad + cast to matmul_dtype once here so
    # the per-tile DMA moves half the bytes in the bf16 path.
    xp = jnp.pad(x.astype(matmul_dtype),
                 ((0, b_pad - batch), (0, in_pad - in_dim)))

    # --- parameter glue (once per call; O(128*D), no DxD materialization) ---
    w1p = jnp.pad(w1, ((0, in_pad - in_dim), (0, 0)))             # (IN_PAD,128)

    # fuse the two hidden NoisyLinears: feat @ [wah | wvh] + [bah | bvh]
    wh = jnp.concatenate([wah, wvh], axis=1)                      # (128, 256)
    bh = jnp.concatenate([bah, bvh], axis=1)                      # (1, 256)

    # dueling combine folded directly into the output weights/biases:
    #   adv-part columns:  wadv - mean_over_actions(wadv)   (per atom)
    #   value-part columns: wval broadcast across actions
    def _sub_action_mean(w):                 # (rows, D) action-major columns
        rows = w.shape[0]
        w3 = w.reshape(rows, out_dim, atom_size)
        return (w3 - w3.mean(axis=1, keepdims=True)).reshape(rows, D)

    def _tile_actions(w):                    # (rows, atom_size) -> (rows, D)
        return jnp.tile(w, (1, out_dim))

    wq = jnp.concatenate([_sub_action_mean(wadv), _tile_actions(wval)], axis=0)
    bq = _sub_action_mean(badv) + _tile_actions(bval)             # (1, D)
    wq = jnp.pad(wq, ((0, 0), (0, dp - D)))                       # (256, DP)
    bq = jnp.pad(bq, ((0, 0), (0, dp - D)), constant_values=-1e30)  # exp(pad)=0

    # segment-sum / broadcast / support matrices for the softmax tail
    # (lane-aligned; 0/1 entries are exact in bf16)
    idx = jnp.arange(D)
    seg = idx // atom_size                  # action index of each flat column
    atom = idx % atom_size                  # atom index of each flat column
    msum = jnp.zeros((dp, out_pad), f32).at[idx, seg].set(1.0)    # (DP, out_pad)
    bc2 = msum.T                                                  # (out_pad, DP)
    msup = jnp.zeros((dp, out_pad), f32).at[idx, seg].set(
        support.astype(f32)[atom])                                # (DP, out_pad)

    # all MXU operands in matmul_dtype (bf16 on v6e/v7x); accumulation f32
    w1p = w1p.astype(matmul_dtype)
    wh = wh.astype(matmul_dtype)
    wq = wq.astype(matmul_dtype)
    msum = msum.astype(matmul_dtype)
    bc2 = bc2.astype(matmul_dtype)
    msup = msup.astype(matmul_dtype)

    def _resident(a):
        # weights/constants: index_map is constant, so single-buffer them to
        # halve their VMEM footprint; fall back if this build lacks the API.
        if single_buffer_residents:
            try:
                return pl.BlockSpec(a.shape, lambda i: (0, 0),
                                    pipeline_mode=pl.Buffered(buffer_count=1))
            except TypeError:
                pass
        return pl.BlockSpec(a.shape, lambda i: (0, 0))

    out = pl.pallas_call(
        _network_kernel,
        out_shape=jax.ShapeDtypeStruct((b_pad, out_pad), f32),
        grid=grid,
        in_specs=[
            pl.BlockSpec((tb, in_pad), lambda i: (i, 0)),   # x: tiled over batch
            _resident(w1p), _resident(b1), _resident(wh), _resident(bh),
            _resident(wq), _resident(bq), _resident(msum), _resident(bc2),
            _resident(msup),
        ],
        out_specs=pl.BlockSpec((tb, out_pad), lambda i: (i, 0)),
        compiler_params=pltpu.CompilerParams(
            # batch axis is embarrassingly parallel -> megacore sharding
            dimension_semantics=("parallel",),
            # explicit scoped-VMEM limit so large TILE_B works on v5e's 16 MiB
            # default (still well under v7x's 64 MiB physical VMEM at TILE_B=512)
            vmem_limit_bytes=64 * 1024 * 1024,
        ),
    )(xp, w1p, b1, wh, bh, wq, bq, msum, bc2, msup)

    return out[:batch, :out_dim]


# --------------------------- parameter building ---------------------------- #
def _scale_noise(key, size):
    x = jax.random.normal(key, (size,), dtype=jnp.float32)
    return jnp.sign(x) * jnp.sqrt(jnp.abs(x))


def _noisy_linear_params(key, in_f, out_f, std_init=0.5):
    """Effective (mu + sigma*eps) weights of a NoisyLinear, stored (in, out)."""
    k_wmu, k_bmu, k_ein, k_eout = jax.random.split(key, 4)
    mu_range = 1.0 / math.sqrt(in_f)
    weight_mu = jax.random.uniform(k_wmu, (out_f, in_f), jnp.float32,
                                   -mu_range, mu_range)
    weight_sigma = jnp.full((out_f, in_f), std_init / math.sqrt(in_f), jnp.float32)
    bias_mu = jax.random.uniform(k_bmu, (out_f,), jnp.float32, -mu_range, mu_range)
    bias_sigma = jnp.full((out_f,), std_init / math.sqrt(out_f), jnp.float32)
    eps_in = _scale_noise(k_ein, in_f)
    eps_out = _scale_noise(k_eout, out_f)
    weight_eps = jnp.outer(eps_out, eps_in)
    bias_eps = eps_out
    w_eff = weight_mu + weight_sigma * weight_eps                 # (out, in)
    b_eff = bias_mu + bias_sigma * bias_eps                       # (out,)
    return w_eff.T, b_eff.reshape(1, out_f)


def _linear_params(key, in_f, out_f):
    k_w, k_b = jax.random.split(key)
    bound = 1.0 / math.sqrt(in_f)
    w = jax.random.uniform(k_w, (out_f, in_f), jnp.float32, -bound, bound)
    b = jax.random.uniform(k_b, (out_f,), jnp.float32, -bound, bound)
    return w.T, b.reshape(1, out_f)


def make_params(key, in_dim, out_dim, atom_size):
    k1, k2, k3, k4, k5 = jax.random.split(key, 5)
    w1, b1 = _linear_params(k1, in_dim, HIDDEN)
    wah, bah = _noisy_linear_params(k2, HIDDEN, HIDDEN)
    wadv, badv = _noisy_linear_params(k3, HIDDEN, out_dim * atom_size)
    wvh, bvh = _noisy_linear_params(k4, HIDDEN, HIDDEN)
    wval, bval = _noisy_linear_params(k5, HIDDEN, atom_size)
    return (w1, b1, wah, bah, wvh, bvh, wadv, badv, wval, bval)


# ------------------------------ pure-JAX ref ------------------------------- #
def network_forward_ref(x, params, support, out_dim, atom_size):
    (w1, b1, wah, bah, wvh, bvh, wadv, badv, wval, bval) = params
    feat = jax.nn.relu(x @ w1 + b1)
    adv_hid = jax.nn.relu(feat @ wah + bah)
    val_hid = jax.nn.relu(feat @ wvh + bvh)
    advantage = (adv_hid @ wadv + badv).reshape(-1, out_dim, atom_size)
    value = (val_hid @ wval + bval).reshape(-1, 1, atom_size)
    q_atoms = value + advantage - advantage.mean(axis=1, keepdims=True)
    dist = jax.nn.softmax(q_atoms, axis=-1)
    dist = jnp.maximum(dist, 0.001)          # torch clamp(min=0.001)
    return jnp.sum(dist * support, axis=2)


# ---------------------------------- main ----------------------------------- #
if __name__ == "__main__":
    batch, in_dim, out_dim, atom_size = 2, 32, 4, 8
    key = jax.random.PRNGKey(0)
    k_x, k_p = jax.random.split(key)

    x = jax.random.normal(k_x, (batch, in_dim), dtype=jnp.float32)
    params = make_params(k_p, in_dim, out_dim, atom_size)
    support = jnp.linspace(0.0, 200.0, atom_size, dtype=jnp.float32)

    q_ref = network_forward_ref(x, params, support, out_dim, atom_size)

    def run(dtype):
        # If this JAX build rejects single-buffered residents at lowering
        # time, retry with default double-buffering (perf-only fallback).
        try:
            return jax.block_until_ready(
                network_forward(x, params, support, out_dim, atom_size,
                                matmul_dtype=dtype))
        except Exception:
            return jax.block_until_ready(
                network_forward(x, params, support, out_dim, atom_size,
                                matmul_dtype=dtype,
                                single_buffer_residents=False))

    # f32 MXU path: matches the module's math up to the approx reciprocal and
    # the (exact-in-real-arithmetic) dueling-fold reassociation.
    q32 = run(jnp.float32)
    np.testing.assert_allclose(np.asarray(q32), np.asarray(q_ref),
                               rtol=5e-3, atol=2e-1)

    # bf16 MXU path (default; recommended on v6e/v7x) -- looser tolerance for
    # bf16 operands (f32 accumulation) vs. the f32 reference.
    qbf = run(jnp.bfloat16)
    np.testing.assert_allclose(np.asarray(qbf), np.asarray(q_ref),
                               rtol=5e-2, atol=2.0)

    print("KERNEL_OK")
</pallas_src>

<mosaic_0001>
module attributes {stable_mosaic.version = 11 : i64} {
  func.func @_network_kernel(%arg0: i32, %arg1: memref<16x128xf32, #tpu.memory_space<vmem>>, %arg2: memref<128x128xf32, #tpu.memory_space<vmem>>, %arg3: memref<1x128xf32, #tpu.memory_space<vmem>>, %arg4: memref<128x256xf32, #tpu.memory_space<vmem>>, %arg5: memref<1x256xf32, #tpu.memory_space<vmem>>, %arg6: memref<256x128xf32, #tpu.memory_space<vmem>>, %arg7: memref<1x128xf32, #tpu.memory_space<vmem>>, %arg8: memref<128x128xf32, #tpu.memory_space<vmem>>, %arg9: memref<128x128xf32, #tpu.memory_space<vmem>>, %arg10: memref<128x128xf32, #tpu.memory_space<vmem>>, %arg11: memref<16x128xf32, #tpu.memory_space<vmem>>) attributes {dimension_semantics = [#tpu.dimension_semantics<parallel>], iteration_bounds = array<i64: 1>, scalar_prefetch = 0 : i64, scratch_operands = 0 : i64, tpu.core_type = #tpu.core_type<tc>, window_params = [{transform_indices = @transform_0, window_bounds = array<i64: 16, 128>}, {pipeline_mode = #tpu.pipeline_mode<synchronous>, transform_indices = @transform_1, window_bounds = array<i64: 128, 128>}, {pipeline_mode = #tpu.pipeline_mode<synchronous>, transform_indices = @transform_2, window_bounds = array<i64: 1, 128>}, {pipeline_mode = #tpu.pipeline_mode<synchronous>, transform_indices = @transform_3, window_bounds = array<i64: 128, 256>}, {pipeline_mode = #tpu.pipeline_mode<synchronous>, transform_indices = @transform_4, window_bounds = array<i64: 1, 256>}, {pipeline_mode = #tpu.pipeline_mode<synchronous>, transform_indices = @transform_5, window_bounds = array<i64: 256, 128>}, {pipeline_mode = #tpu.pipeline_mode<synchronous>, transform_indices = @transform_6, window_bounds = array<i64: 1, 128>}, {pipeline_mode = #tpu.pipeline_mode<synchronous>, transform_indices = @transform_7, window_bounds = array<i64: 128, 128>}, {pipeline_mode = #tpu.pipeline_mode<synchronous>, transform_indices = @transform_8, window_bounds = array<i64: 128, 128>}, {pipeline_mode = #tpu.pipeline_mode<synchronous>, transform_indices = @transform_9, window_bounds = array<i64: 128, 128>}, {transform_indices = @transform_10, window_bounds = array<i64: 16, 128>}]} {
    %c0 = arith.constant 0 : index
    %c0_0 = arith.constant 0 : index
    %0 = vector.load %arg1[%c0, %c0_0] : memref<16x128xf32, #tpu.memory_space<vmem>>, vector<16x128xf32>
    %c0_1 = arith.constant 0 : index
    %c0_2 = arith.constant 0 : index
    %1 = vector.load %arg2[%c0_1, %c0_2] : memref<128x128xf32, #tpu.memory_space<vmem>>, vector<128x128xf32>
    %cst = arith.constant dense<0.000000e+00> : vector<16x128xf32>
    %2 = tpu.matmul %0, %1, %cst {dimension_numbers = #tpu.dot_dimension_numbers<[1], [0], [0], [1], [0, 0, 1, 1], [], []>} : vector<16x128xf32>, vector<128x128xf32>, vector<16x128xf32> -> vector<16x128xf32>
    %c0_3 = arith.constant 0 : index
    %c0_4 = arith.constant 0 : index
    %3 = vector.load %arg3[%c0_3, %c0_4] : memref<1x128xf32, #tpu.memory_space<vmem>>, vector<1x128xf32>
    %4 = vector.broadcast %3 : vector<1x128xf32> to vector<16x128xf32>
    %5 = arith.addf %2, %4 : vector<16x128xf32>
    %cst_5 = arith.constant 0.000000e+00 : f32
    %6 = vector.broadcast %cst_5 : f32 to vector<16x128xf32>
    %7 = arith.maximumf %5, %6 : vector<16x128xf32>
    %c0_6 = arith.constant 0 : index
    %c0_7 = arith.constant 0 : index
    %8 = vector.load %arg4[%c0_6, %c0_7] : memref<128x256xf32, #tpu.memory_space<vmem>>, vector<128x256xf32>
    %cst_8 = arith.constant dense<0.000000e+00> : vector<16x256xf32>
    %9 = tpu.matmul %7, %8, %cst_8 {dimension_numbers = #tpu.dot_dimension_numbers<[1], [0], [0], [1], [0, 0, 1, 1], [], []>} : vector<16x128xf32>, vector<128x256xf32>, vector<16x256xf32> -> vector<16x256xf32>
    %c0_9 = arith.constant 0 : index
    %c0_10 = arith.constant 0 : index
    %10 = vector.load %arg5[%c0_9, %c0_10] : memref<1x256xf32, #tpu.memory_space<vmem>>, vector<1x256xf32>
    %11 = vector.broadcast %10 : vector<1x256xf32> to vector<16x256xf32>
    %12 = arith.addf %9, %11 : vector<16x256xf32>
    %cst_11 = arith.constant 0.000000e+00 : f32
    %13 = vector.broadcast %cst_11 : f32 to vector<16x256xf32>
    %14 = arith.maximumf %12, %13 : vector<16x256xf32>
    %c0_12 = arith.constant 0 : index
    %c0_13 = arith.constant 0 : index
    %15 = vector.load %arg6[%c0_12, %c0_13] : memref<256x128xf32, #tpu.memory_space<vmem>>, vector<256x128xf32>
    %cst_14 = arith.constant dense<0.000000e+00> : vector<16x128xf32>
    %16 = tpu.matmul %14, %15, %cst_14 {dimension_numbers = #tpu.dot_dimension_numbers<[1], [0], [0], [1], [0, 0, 1, 1], [], []>} : vector<16x256xf32>, vector<256x128xf32>, vector<16x128xf32> -> vector<16x128xf32>
    %c0_15 = arith.constant 0 : index
    %c0_16 = arith.constant 0 : index
    %17 = vector.load %arg7[%c0_15, %c0_16] : memref<1x128xf32, #tpu.memory_space<vmem>>, vector<1x128xf32>
    %18 = vector.broadcast %17 : vector<1x128xf32> to vector<16x128xf32>
    %19 = arith.addf %16, %18 : vector<16x128xf32>
    %cst_17 = arith.constant dense<0xFF800000> : vector<16xf32>
    %20 = vector.multi_reduction <maximumf>, %19, %cst_17 [1] : vector<16x128xf32> to vector<16xf32>
    %21 = vector.shape_cast %20 : vector<16xf32> to vector<16x1xf32>
    %22 = vector.broadcast %21 : vector<16x1xf32> to vector<16x128xf32>
    %23 = arith.subf %19, %22 : vector<16x128xf32>
    %24 = math.exp %23 : vector<16x128xf32>
    %c0_18 = arith.constant 0 : index
    %c0_19 = arith.constant 0 : index
    %25 = vector.load %arg8[%c0_18, %c0_19] : memref<128x128xf32, #tpu.memory_space<vmem>>, vector<128x128xf32>
    %cst_20 = arith.constant dense<0.000000e+00> : vector<16x128xf32>
    %26 = tpu.matmul %24, %25, %cst_20 {dimension_numbers = #tpu.dot_dimension_numbers<[1], [0], [0], [1], [0, 0, 1, 1], [], []>} : vector<16x128xf32>, vector<128x128xf32>, vector<16x128xf32> -> vector<16x128xf32>
    %cst_21 = arith.constant 9.99999996E-13 : f32
    %27 = vector.broadcast %cst_21 : f32 to vector<16x128xf32>
    %28 = arith.maximumf %26, %27 : vector<16x128xf32>
    %29 = tpu.reciprocal %28 {approx = true} : vector<16x128xf32> -> vector<16x128xf32>
    %c0_22 = arith.constant 0 : index
    %c0_23 = arith.constant 0 : index
    %30 = vector.load %arg9[%c0_22, %c0_23] : memref<128x128xf32, #tpu.memory_space<vmem>>, vector<128x128xf32>
    %cst_24 = arith.constant dense<0.000000e+00> : vector<16x128xf32>
    %31 = tpu.matmul %29, %30, %cst_24 {dimension_numbers = #tpu.dot_dimension_numbers<[1], [0], [0], [1], [0, 0, 1, 1], [], []>} : vector<16x128xf32>, vector<128x128xf32>, vector<16x128xf32> -> vector<16x128xf32>
    %32 = arith.mulf %24, %31 : vector<16x128xf32>
    %cst_25 = arith.constant 1.000000e-03 : f32
    %33 = vector.broadcast %cst_25 : f32 to vector<16x128xf32>
    %34 = arith.maximumf %32, %33 : vector<16x128xf32>
    %c0_26 = arith.constant 0 : index
    %c0_27 = arith.constant 0 : index
    %35 = vector.load %arg10[%c0_26, %c0_27] : memref<128x128xf32, #tpu.memory_space<vmem>>, vector<128x128xf32>
    %cst_28 = arith.constant dense<0.000000e+00> : vector<16x128xf32>
    %36 = tpu.matmul %34, %35, %cst_28 {dimension_numbers = #tpu.dot_dimension_numbers<[1], [0], [0], [1], [0, 0, 1, 1], [], []>} : vector<16x128xf32>, vector<128x128xf32>, vector<16x128xf32> -> vector<16x128xf32>
    %c0_29 = arith.constant 0 : index
    %c0_30 = arith.constant 0 : index
    %37 = vector.load %arg11[%c0_29, %c0_30] : memref<16x128xf32, #tpu.memory_space<vmem>>, vector<16x128xf32>
    tpu.vector_store %arg11[%c0_29, %c0_30], %36 {strides = array<i32>} : memref<16x128xf32, #tpu.memory_space<vmem>>, vector<16x128xf32>,
    return
  }
  func.func @transform_0(%arg0: i32) -> (i32, i32) {
    %c0_i32 = arith.constant 0 : i32
    %c0_i32_0 = arith.constant 0 : i32
    return %arg0, %c0_i32 : i32, i32
  }
  func.func @transform_1(%arg0: i32) -> (i32, i32) {
    %c0_i32 = arith.constant 0 : i32
    %c0_i32_0 = arith.constant 0 : i32
    %c0_i32_1 = arith.constant 0 : i32
    return %c0_i32, %c0_i32_0 : i32, i32
  }
  func.func @transform_2(%arg0: i32) -> (i32, i32) {
    %c0_i32 = arith.constant 0 : i32
    %c0_i32_0 = arith.constant 0 : i32
    %c0_i32_1 = arith.constant 0 : i32
    return %c0_i32, %c0_i32_0 : i32, i32
  }
  func.func @transform_3(%arg0: i32) -> (i32, i32) {
    %c0_i32 = arith.constant 0 : i32
    %c0_i32_0 = arith.constant 0 : i32
    %c0_i32_1 = arith.constant 0 : i32
    return %c0_i32, %c0_i32_0 : i32, i32
  }
  func.func @transform_4(%arg0: i32) -> (i32, i32) {
    %c0_i32 = arith.constant 0 : i32
    %c0_i32_0 = arith.constant 0 : i32
    %c0_i32_1 = arith.constant 0 : i32
    return %c0_i32, %c0_i32_0 : i32, i32
  }
  func.func @transform_5(%arg0: i32) -> (i32, i32) {
    %c0_i32 = arith.constant 0 : i32
    %c0_i32_0 = arith.constant 0 : i32
    %c0_i32_1 = arith.constant 0 : i32
    return %c0_i32, %c0_i32_0 : i32, i32
  }
  func.func @transform_6(%arg0: i32) -> (i32, i32) {
    %c0_i32 = arith.constant 0 : i32
    %c0_i32_0 = arith.constant 0 : i32
    %c0_i32_1 = arith.constant 0 : i32
    return %c0_i32, %c0_i32_0 : i32, i32
  }
  func.func @transform_7(%arg0: i32) -> (i32, i32) {
    %c0_i32 = arith.constant 0 : i32
    %c0_i32_0 = arith.constant 0 : i32
    %c0_i32_1 = arith.constant 0 : i32
    return %c0_i32, %c0_i32_0 : i32, i32
  }
  func.func @transform_8(%arg0: i32) -> (i32, i32) {
    %c0_i32 = arith.constant 0 : i32
    %c0_i32_0 = arith.constant 0 : i32
    %c0_i32_1 = arith.constant 0 : i32
    return %c0_i32, %c0_i32_0 : i32, i32
  }
  func.func @transform_9(%arg0: i32) -> (i32, i32) {
    %c0_i32 = arith.constant 0 : i32
    %c0_i32_0 = arith.constant 0 : i32
    %c0_i32_1 = arith.constant 0 : i32
    return %c0_i32, %c0_i32_0 : i32, i32
  }
  func.func @transform_10(%arg0: i32) -> (i32, i32) {
    %c0_i32 = arith.constant 0 : i32
    %c0_i32_0 = arith.constant 0 : i32
    return %arg0, %c0_i32 : i32, i32
  }
}

module attributes {stable_mosaic.version = 11 : i64} {
  func.func @_network_kernel(%arg0: i32, %arg1: memref<16x128xf32, #tpu.memory_space<vmem>>, %arg2: memref<128x128xf32, #tpu.memory_space<vmem>>, %arg3: memref<1x128xf32, #tpu.memory_space<vmem>>, %arg4: memref<128x256xf32, #tpu.memory_space<vmem>>, %arg5: memref<1x256xf32, #tpu.memory_space<vmem>>, %arg6: memref<256x128xf32, #tpu.memory_space<vmem>>, %arg7: memref<1x128xf32, #tpu.memory_space<vmem>>, %arg8: memref<128x128xf32, #tpu.memory_space<vmem>>, %arg9: memref<128x128xf32, #tpu.memory_space<vmem>>, %arg10: memref<128x128xf32, #tpu.memory_space<vmem>>, %arg11: memref<16x128xf32, #tpu.memory_space<vmem>>) attributes {dimension_semantics = [#tpu.dimension_semantics<parallel>], iteration_bounds = array<i64: 1>, scalar_prefetch = 0 : i64, scratch_operands = 0 : i64, tpu.core_type = #tpu.core_type<tc>, window_params = [{transform_indices = @transform_0, window_bounds = array<i64: 16, 128>}, {pipeline_mode = #tpu.pipeline_mode<synchronous>, transform_indices = @transform_1, window_bounds = array<i64: 128, 128>}, {pipeline_mode = #tpu.pipeline_mode<synchronous>, transform_indices = @transform_2, window_bounds = array<i64: 1, 128>}, {pipeline_mode = #tpu.pipeline_mode<synchronous>, transform_indices = @transform_3, window_bounds = array<i64: 128, 256>}, {pipeline_mode = #tpu.pipeline_mode<synchronous>, transform_indices = @transform_4, window_bounds = array<i64: 1, 256>}, {pipeline_mode = #tpu.pipeline_mode<synchronous>, transform_indices = @transform_5, window_bounds = array<i64: 256, 128>}, {pipeline_mode = #tpu.pipeline_mode<synchronous>, transform_indices = @transform_6, window_bounds = array<i64: 1, 128>}, {pipeline_mode = #tpu.pipeline_mode<synchronous>, transform_indices = @transform_7, window_bounds = array<i64: 128, 128>}, {pipeline_mode = #tpu.pipeline_mode<synchronous>, transform_indices = @transform_8, window_bounds = array<i64: 128, 128>}, {pipeline_mode = #tpu.pipeline_mode<synchronous>, transform_indices = @transform_9, window_bounds = array<i64: 128, 128>}, {transform_indices = @transform_10, window_bounds = array<i64: 16, 128>}]} {
    %c0 = arith.constant 0 : index
    %c0_0 = arith.constant 0 : index
    %0 = vector.load %arg1[%c0, %c0_0] : memref<16x128xf32, #tpu.memory_space<vmem>>, vector<16x128xf32>
    %c0_1 = arith.constant 0 : index
    %c0_2 = arith.constant 0 : index
    %1 = vector.load %arg2[%c0_1, %c0_2] : memref<128x128xf32, #tpu.memory_space<vmem>>, vector<128x128xf32>
    %cst = arith.constant dense<0.000000e+00> : vector<16x128xf32>
    %2 = tpu.matmul %0, %1, %cst {dimension_numbers = #tpu.dot_dimension_numbers<[1], [0], [0], [1], [0, 0, 1, 1], [], []>} : vector<16x128xf32>, vector<128x128xf32>, vector<16x128xf32> -> vector<16x128xf32>
    %c0_3 = arith.constant 0 : index
    %c0_4 = arith.constant 0 : index
    %3 = vector.load %arg3[%c0_3, %c0_4] : memref<1x128xf32, #tpu.memory_space<vmem>>, vector<1x128xf32>
    %4 = vector.broadcast %3 : vector<1x128xf32> to vector<16x128xf32>
    %5 = arith.addf %2, %4 : vector<16x128xf32>
    %cst_5 = arith.constant 0.000000e+00 : f32
    %6 = vector.broadcast %cst_5 : f32 to vector<16x128xf32>
    %7 = arith.maximumf %5, %6 : vector<16x128xf32>
    %c0_6 = arith.constant 0 : index
    %c0_7 = arith.constant 0 : index
    %8 = vector.load %arg4[%c0_6, %c0_7] : memref<128x256xf32, #tpu.memory_space<vmem>>, vector<128x256xf32>
    %cst_8 = arith.constant dense<0.000000e+00> : vector<16x256xf32>
    %9 = tpu.matmul %7, %8, %cst_8 {dimension_numbers = #tpu.dot_dimension_numbers<[1], [0], [0], [1], [0, 0, 1, 1], [], []>} : vector<16x128xf32>, vector<128x256xf32>, vector<16x256xf32> -> vector<16x256xf32>
    %c0_9 = arith.constant 0 : index
    %c0_10 = arith.constant 0 : index
    %10 = vector.load %arg5[%c0_9, %c0_10] : memref<1x256xf32, #tpu.memory_space<vmem>>, vector<1x256xf32>
    %11 = vector.broadcast %10 : vector<1x256xf32> to vector<16x256xf32>
    %12 = arith.addf %9, %11 : vector<16x256xf32>
    %cst_11 = arith.constant 0.000000e+00 : f32
    %13 = vector.broadcast %cst_11 : f32 to vector<16x256xf32>
    %14 = arith.maximumf %12, %13 : vector<16x256xf32>
    %c0_12 = arith.constant 0 : index
    %c0_13 = arith.constant 0 : index
    %15 = vector.load %arg6[%c0_12, %c0_13] : memref<256x128xf32, #tpu.memory_space<vmem>>, vector<256x128xf32>
    %cst_14 = arith.constant dense<0.000000e+00> : vector<16x128xf32>
    %16 = tpu.matmul %14, %15, %cst_14 {dimension_numbers = #tpu.dot_dimension_numbers<[1], [0], [0], [1], [0, 0, 1, 1], [], []>} : vector<16x256xf32>, vector<256x128xf32>, vector<16x128xf32> -> vector<16x128xf32>
    %c0_15 = arith.constant 0 : index
    %c0_16 = arith.constant 0 : index
    %17 = vector.load %arg7[%c0_15, %c0_16] : memref<1x128xf32, #tpu.memory_space<vmem>>, vector<1x128xf32>
    %18 = vector.broadcast %17 : vector<1x128xf32> to vector<16x128xf32>
    %19 = arith.addf %16, %18 : vector<16x128xf32>
    %cst_17 = arith.constant dense<0xFF800000> : vector<16xf32>
    %20 = vector.multi_reduction <maximumf>, %19, %cst_17 [1] : vector<16x128xf32> to vector<16xf32>
    %21 = vector.shape_cast %20 : vector<16xf32> to vector<16x1xf32>
    %22 = vector.broadcast %21 : vector<16x1xf32> to vector<16x128xf32>
    %23 = arith.subf %19, %22 : vector<16x128xf32>
    %24 = math.exp %23 : vector<16x128xf32>
    %c0_18 = arith.constant 0 : index
    %c0_19 = arith.constant 0 : index
    %25 = vector.load %arg8[%c0_18, %c0_19] : memref<128x128xf32, #tpu.memory_space<vmem>>, vector<128x128xf32>
    %cst_20 = arith.constant dense<0.000000e+00> : vector<16x128xf32>
    %26 = tpu.matmul %24, %25, %cst_20 {dimension_numbers = #tpu.dot_dimension_numbers<[1], [0], [0], [1], [0, 0, 1, 1], [], []>} : vector<16x128xf32>, vector<128x128xf32>, vector<16x128xf32> -> vector<16x128xf32>
    %cst_21 = arith.constant 9.99999996E-13 : f32
    %27 = vector.broadcast %cst_21 : f32 to vector<16x128xf32>
    %28 = arith.maximumf %26, %27 : vector<16x128xf32>
    %29 = tpu.reciprocal %28 {approx = true} : vector<16x128xf32> -> vector<16x128xf32>
    %c0_22 = arith.constant 0 : index
    %c0_23 = arith.constant 0 : index
    %30 = vector.load %arg9[%c0_22, %c0_23] : memref<128x128xf32, #tpu.memory_space<vmem>>, vector<128x128xf32>
    %cst_24 = arith.constant dense<0.000000e+00> : vector<16x128xf32>
    %31 = tpu.matmul %29, %30, %cst_24 {dimension_numbers = #tpu.dot_dimension_numbers<[1], [0], [0], [1], [0, 0, 1, 1], [], []>} : vector<16x128xf32>, vector<128x128xf32>, vector<16x128xf32> -> vector<16x128xf32>
    %32 = arith.mulf %24, %31 : vector<16x128xf32>
    %cst_25 = arith.constant 1.000000e-03 : f32
    %33 = vector.broadcast %cst_25 : f32 to vector<16x128xf32>
    %34 = arith.maximumf %32, %33 : vector<16x128xf32>
    %c0_26 = arith.constant 0 : index
    %c0_27 = arith.constant 0 : index
    %35 = vector.load %arg10[%c0_26, %c0_27] : memref<128x128xf32, #tpu.memory_space<vmem>>, vector<128x128xf32>
    %cst_28 = arith.constant dense<0.000000e+00> : vector<16x128xf32>
    %36 = tpu.matmul %34, %35, %cst_28 {dimension_numbers = #tpu.dot_dimension_numbers<[1], [0], [0], [1], [0, 0, 1, 1], [], []>} : vector<16x128xf32>, vector<128x128xf32>, vector<16x128xf32> -> vector<16x128xf32>
    %c0_29 = arith.constant 0 : index
    %c0_30 = arith.constant 0 : index
    %37 = vector.load %arg11[%c0_29, %c0_30] : memref<16x128xf32, #tpu.memory_space<vmem>>, vector<16x128xf32>
    tpu.vector_store %arg11[%c0_29, %c0_30], %36 {strides = array<i32>} : memref<16x128xf32, #tpu.memory_space<vmem>>, vector<16x128xf32>,
    return
  }
  func.func @transform_0(%arg0: i32) -> (i32, i32) {
    %c0_i32 = arith.constant 0 : i32
    %c0_i32_0 = arith.constant 0 : i32
    return %arg0, %c0_i32 : i32, i32
  }
  func.func @transform_1(%arg0: i32) -> (i32, i32) {
    %c0_i32 = arith.constant 0 : i32
    %c0_i32_0 = arith.constant 0 : i32
    %c0_i32_1 = arith.constant 0 : i32
    return %c0_i32, %c0_i32_0 : i32, i32
  }
  func.func @transform_2(%arg0: i32) -> (i32, i32) {
    %c0_i32 = arith.constant 0 : i32
    %c0_i32_0 = arith.constant 0 : i32
    %c0_i32_1 = arith.constant 0 : i32
    return %c0_i32, %c0_i32_0 : i32, i32
  }
  func.func @transform_3(%arg0: i32) -> (i32, i32) {
    %c0_i32 = arith.constant 0 : i32
    %c0_i32_0 = arith.constant 0 : i32
    %c0_i32_1 = arith.constant 0 : i32
    return %c0_i32, %c0_i32_0 : i32, i32
  }
  func.func @transform_4(%arg0: i32) -> (i32, i32) {
    %c0_i32 = arith.constant 0 : i32
    %c0_i32_0 = arith.constant 0 : i32
    %c0_i32_1 = arith.constant 0 : i32
    return %c0_i32, %c0_i32_0 : i32, i32
  }
  func.func @transform_5(%arg0: i32) -> (i32, i32) {
    %c0_i32 = arith.constant 0 : i32
    %c0_i32_0 = arith.constant 0 : i32
    %c0_i32_1 = arith.constant 0 : i32
    return %c0_i32, %c0_i32_0 : i32, i32
  }
  func.func @transform_6(%arg0: i32) -> (i32, i32) {
    %c0_i32 = arith.constant 0 : i32
    %c0_i32_0 = arith.constant 0 : i32
    %c0_i32_1 = arith.constant 0 : i32
    return %c0_i32, %c0_i32_0 : i32, i32
  }
  func.func @transform_7(%arg0: i32) -> (i32, i32) {
    %c0_i32 = arith.constant 0 : i32
    %c0_i32_0 = arith.constant 0 : i32
    %c0_i32_1 = arith.constant 0 : i32
    return %c0_i32, %c0_i32_0 : i32, i32
  }
  func.func @transform_8(%arg0: i32) -> (i32, i32) {
    %c0_i32 = arith.constant 0 : i32
    %c0_i32_0 = arith.constant 0 : i32
    %c0_i32_1 = arith.constant 0 : i32
    return %c0_i32, %c0_i32_0 : i32, i32
  }
  func.func @transform_9(%arg0: i32) -> (i32, i32) {
    %c0_i32 = arith.constant 0 : i32
    %c0_i32_0 = arith.constant 0 : i32
    %c0_i32_1 = arith.constant 0 : i32
    return %c0_i32, %c0_i32_0 : i32, i32
  }
  func.func @transform_10(%arg0: i32) -> (i32, i32) {
    %c0_i32 = arith.constant 0 : i32
    %c0_i32_0 = arith.constant 0 : i32
    return %arg0, %c0_i32 : i32, i32
  }
}

</mosaic_0001>

<bundles_post_ra>
// kernel: tpu_custom_call.1
= control target key start
LH: loop header
LB: loop body
LE: loop exit
PB: predicated region body
PF: predicated region fallthrough
CT: control target
= control target key end

     0   :  { %15 = vsyncpa [#allocation3], 0  ;;  %s1358_s0 = inlined_call_operand.hbm [shape: f32[16,128], index: 0, kind: input, shape index: {}]   ;;  %s1359_s1 = inlined_call_operand.hbm [shape: f32[128,128], index: 1, kind: input, shape index: {}]   ;;  %s1360_s2 = inlined_call_operand.vmem [shape: f32[1,128], index: 2, kind: input, shape index: {}]   ;;  %s1361_s3 = inlined_call_operand.hbm [shape: f32[128,256], index: 3, kind: input, shape index: {}]   ;;  %s1362_s4 = inlined_call_operand.vmem [shape: f32[1,256], index: 4, kind: input, shape index: {}]   ;;  %s1363_s5 = inlined_call_operand.hbm [shape: f32[256,128], index: 5, kind: input, shape index: {}]   ;;  %s1364_s6 = inlined_call_operand.vmem [shape: f32[1,128], index: 6, kind: input, shape index: {}]   ;;  %s1365_s7 = inlined_call_operand.hbm [shape: f32[128,128], index: 7, kind: input, shape index: {}]   ;;  %s1366_s8 = inlined_call_operand.hbm [shape: f32[128,128], index: 8, kind: input, shape index: {}]   ;;  %s1367_s9 = inlined_call_operand.hbm [shape: f32[128,128], index: 9, kind: input, shape index: {}]   ;;  %s1368_s10 = inlined_call_operand.hbm [shape: f32[16,128], index: 10, kind: output, shape index: {}]  }
   0x1   :  { %16 = vsyncpa [#allocation6], 0 }
   0x2   :  { %17 = vsyncpa [#allocation9], 0 }
   0x3   :  { %18 = vsyncpa [#allocation12], 0 }
   0x4   :  { %19 = vsyncpa [#allocation4], 0  ;;  %s1228_s13 = smov [#allocation5]   ;;  %s1229_s15 = smov [#allocation8]  }
   0x5   :  { %s37_s14 = sshll.u32 %s1228_s13, 4  ;;  %s65_s16 = sshll.u32 %s1229_s15, 4  ;;  %s38_s14 = int_to_ptr.vmem [resolvable:$true] %s37_s14  ;;  %s66_s16 = int_to_ptr.vmem [resolvable:$true] %s65_s16 }
   0x6   :  { %s1066_s17 = scalar_lea.vmem %s38_s14, 2048  ;;  %p1071_p1 = scmp.lt.s32.totalorder %s38_s14, %s38_s14 }
   0x7   :  { %p1067_p0 = scmp.ne.s32.totalorder %s38_s14, %s1066_s17  ;;  %p1072_p2 = scmp.lt.s32.totalorder %s1066_s17, %s1066_s17 }
   0x9   :  { %p1073_p3 = por %p1072_p2, %p1071_p1 }
   0xb   :  { %p1074_p4 = pnand %p1073_p3, %p1067_p0 }
   0xd   :  { %1077 = shalt.err (!%p1074_p4)
}
   0xe   :  { %s1230_s18 = smov 128   ;;  %s1231_s19 = smov 8  }
   0xf   :  { %43 = dma.hbm_to_vmem [thread:$0]  %s1359_s1, 2048, %s38_s14, [#allocation6], %s1230_s18, %s1230_s18, %s1231_s19  }
  0x10   :  { %s1086_s22 = scalar_lea.vmem %s66_s16, 4096  ;;  %p1091_p6 = scmp.lt.s32.totalorder %s66_s16, %s66_s16 }
  0x11   :  { %p1087_p5 = scmp.ne.s32.totalorder %s66_s16, %s1086_s22  ;;  %p1092_p7 = scmp.lt.s32.totalorder %s1086_s22, %s1086_s22 }
  0x13   :  { %p1093_p8 = por %p1092_p7, %p1091_p6 }
  0x15   :  { %p1094_p9 = pnand %p1093_p8, %p1087_p5 }
  0x17   :  { %1097 = shalt.err (!%p1094_p9)
}
  0x18   :  { %71 = dma.hbm_to_vmem [thread:$0]  %s1363_s5, 4096, %s66_s16, [#allocation9], %s1230_s18, %s1230_s18, %s1231_s19  }
  0x19   :  { %s1232_s25 = smov [#allocation11]   ;;  %s1233_s27 = smov [#allocation2]  }
  0x1a   :  { %s91_s26 = sshll.u32 %s1232_s25, 4  ;;  %s25_s28 = sshll.u32 %s1233_s27, 4  ;;  %s92_s26 = int_to_ptr.vmem [resolvable:$true] %s91_s26  ;;  %s26_s28 = int_to_ptr.vmem [resolvable:$true] %s25_s28 }
  0x1b   :  { %s1106_s1 = scalar_lea.vmem %s92_s26, 2048  ;;  %p1111_p11 = scmp.lt.s32.totalorder %s92_s26, %s92_s26 }
  0x1c   :  { %p1107_p10 = scmp.ne.s32.totalorder %s92_s26, %s1106_s1  ;;  %p1112_p12 = scmp.lt.s32.totalorder %s1106_s1, %s1106_s1 }
  0x1e   :  { %p1113_p13 = por %p1112_p12, %p1111_p11 }
  0x20   :  { %p1114_p0 = pnand %p1113_p13, %p1107_p10 }
  0x22   :  { %1117 = shalt.err (!%p1114_p0)
}
  0x23   :  { %97 = dma.hbm_to_vmem [thread:$0]  %s1366_s8, 2048, %s92_s26, [#allocation12], %s1230_s18, %s1230_s18, %s1231_s19  }
  0x24   :  { %s1126_s5 = scalar_lea.vmem %s26_s28, 256  ;;  %p1131_p2 = scmp.lt.s32.totalorder %s26_s28, %s26_s28 }
  0x25   :  { %p1127_p1 = scmp.ne.s32.totalorder %s26_s28, %s1126_s5  ;;  %p1132_p3 = scmp.lt.s32.totalorder %s1126_s5, %s1126_s5 }
  0x27   :  { %p1133_p4 = por %p1132_p3, %p1131_p2 }
  0x29   :  { %p1134_p5 = pnand %p1133_p4, %p1127_p1 }
  0x2b   :  { %1137 = shalt.err (!%p1134_p5)
}
  0x2c   :  { %31 = dma.hbm_to_vmem [thread:$0]  %s1358_s0, 256, %s26_s28, [#allocation3], %s1230_s18, %s1230_s18, %s1231_s19  }
  0x2d   :  { %s1234_s13 = smov [#allocation7]  }
  0x2e   :  { %s51_s14 = sshll.u32 %s1234_s13, 4  ;;  %s52_s14 = int_to_ptr.vmem [resolvable:$true] %s51_s14 }
  0x2f   :  { %s1146_s15 = scalar_lea.vmem %s52_s14, 4096  ;;  %p1151_p7 = scmp.lt.s32.totalorder %s52_s14, %s52_s14 }
  0x30   :  { %p1147_p6 = scmp.ne.s32.totalorder %s52_s14, %s1146_s15  ;;  %p1152_p8 = scmp.lt.s32.totalorder %s1146_s15, %s1146_s15 }
  0x32   :  { %p1153_p9 = por %p1152_p8, %p1151_p7 }
  0x34   :  { %p1154_p10 = pnand %p1153_p9, %p1147_p6 }
  0x36   :  { %1157 = shalt.err (!%p1154_p10)
}
  0x37   :  { %s1235_s8 = smov 256   ;;  %s1236_s16 = smov 16  }
  0x38   :  { %57 = dma.hbm_to_vmem [thread:$0]  %s1361_s3, 4096, %s52_s14, [#allocation6], %s1235_s8, %s1235_s8, %s1236_s16  }
  0x39   :  { %s1237_s21 = smov [#allocation10]   ;;  %s1238_s0 = smov [#allocation13]  }
  0x3a   :  { %s79_s22 = sshll.u32 %s1237_s21, 4  ;;  %s103_s23 = sshll.u32 %s1238_s0, 4  ;;  %s80_s22 = int_to_ptr.vmem [resolvable:$true] %s79_s22  ;;  %s104_s23 = int_to_ptr.vmem [resolvable:$true] %s103_s23 }
  0x3b   :  { %s1166_s24 = scalar_lea.vmem %s80_s22, 2048  ;;  %p1171_p12 = scmp.lt.s32.totalorder %s80_s22, %s80_s22 }
  0x3c   :  { %p1167_p11 = scmp.ne.s32.totalorder %s80_s22, %s1166_s24  ;;  %p1172_p13 = scmp.lt.s32.totalorder %s1166_s24, %s1166_s24 }
  0x3e   :  { %p1173_p0 = por %p1172_p13, %p1171_p12 }
  0x40   :  { %p1174_p1 = pnand %p1173_p0, %p1167_p11 }
  0x42   :  { %1177 = shalt.err (!%p1174_p1)
}
  0x43   :  { %85 = dma.hbm_to_vmem [thread:$0]  %s1365_s7, 2048, %s80_s22, [#allocation9], %s1230_s18, %s1230_s18, %s1231_s19  }
  0x44   :  { %s1186_s3 = scalar_lea.vmem %s104_s23, 2048  ;;  %p1191_p3 = scmp.lt.s32.totalorder %s104_s23, %s104_s23 }
  0x45   :  { %p1187_p2 = scmp.ne.s32.totalorder %s104_s23, %s1186_s3  ;;  %p1192_p4 = scmp.lt.s32.totalorder %s1186_s3, %s1186_s3 }
  0x47   :  { %p1193_p5 = por %p1192_p4, %p1191_p3 }
  0x49   :  { %p1194_p6 = pnand %p1193_p5, %p1187_p2 }
  0x4b   :  { %1197 = shalt.err (!%p1194_p6)
}
  0x4c   :  { %109 = dma.hbm_to_vmem [thread:$0]  %s1367_s9, 2048, %s104_s23, [#allocation12], %s1230_s18, %s1230_s18, %s1231_s19  }
  0x4d   :  { %1218 = dma.done.wait [#allocation3], 256  }
  0x4e   :  { %1219 = vsyncadd [#allocation3], 4294967040 }
  0x4f   :  { %1220 = dma.done.wait [#allocation6], 6144  }
  0x50   :  { %1221 = vsyncadd [#allocation6], 4294961152 }
  0x51   :  { %1222 = dma.done.wait [#allocation9], 6144  }
  0x52   :  { %1223 = vsyncadd [#allocation9], 4294961152 }
  0x53   :  { %1224 = dma.done.wait [#allocation12], 4096  }
  0x54   :  { %1225 = vsyncadd [#allocation12], 4294963200  ;;  %v148_v0 = vld [vmem:[#allocation5 + $0x78] sm:$0xff]  ;;  %v147_v1 = vld [vmem:[#allocation5 + $0x70] sm:$0xff]  ;;  %v1239_v50 = vmov 0.0  }
  0x55   :  { %897 = vmatprep.subr.mxu0 %v148_v0  ;;  %v146_v2 = vld [vmem:[#allocation5 + $0x68] sm:$0xff]  ;;  %v145_v3 = vld [vmem:[#allocation5 + $0x60] sm:$0xff]  ;;  %v144_v4 = vld [vmem:[#allocation5 + $0x58] sm:$0xff]  ;;  %341 = vmatprep.mubr.f32.mxu1 %v1239_v50 }
  0x56   :  { %898 = vmatpush3.msra.mxu0 %v148_v0  ;;  %v131_v5 = vld [vmem:[#allocation2] sm:$0xff]  ;;  %v264_v6 = vld [vmem:[#allocation7 + $0xf8] sm:$0xff]  ;;  %v262_v8 = vld [vmem:[#allocation7 + $0xe8] sm:$0xff] }
  0x57   :  { %899 = vmatprep.subr.mxu0 %v147_v1  ;;  %929 = vmatprep.mubr.f32.mxu0 %v131_v5  ;;  %v263_v7 = vld [vmem:[#allocation7 + $0xf0] sm:$0xff]  ;;  %v261_v9 = vld [vmem:[#allocation7 + $0xe0] sm:$0xff]  ;;  %v260_v11 = vld [vmem:[#allocation7 + $0xd8] sm:$0xff] }
  0x58   :  { %900 = vmatpush3.msra.mxu0 %v147_v1  ;;  %277 = vmatprep.subr.mxu1 %v264_v6  ;;  %v143_v10 = vld [vmem:[#allocation5 + $0x50] sm:$0xff]  ;;  %v142_v13 = vld [vmem:[#allocation5 + $0x48] sm:$0xff]  ;;  %v257_v15 = vld [vmem:[#allocation7 + $0xc0] sm:$0xff] }
  0x59   :  { %901 = vmatprep.subr.mxu0 %v146_v2  ;;  %278 = vmatpush1.msra.mxu1 %v263_v7  ;;  %v259_v12 = vld [vmem:[#allocation7 + $0xd0] sm:$0xff]  ;;  %v258_v14 = vld [vmem:[#allocation7 + $0xc8] sm:$0xff]  ;;  %v141_v16 = vld [vmem:[#allocation5 + $0x40] sm:$0xff] }
  0x5a   :  { %902 = vmatpush3.msra.mxu0 %v146_v2  ;;  %279 = vmatprep.subr.mxu1 %v262_v8  ;;  %v256_v17 = vld [vmem:[#allocation7 + $0xb8] sm:$0xff]  ;;  %v255_v18 = vld [vmem:[#allocation7 + $0xb0] sm:$0xff]  ;;  %v254_v20 = vld [vmem:[#allocation7 + $0xa8] sm:$0xff] }
  0x5b   :  { %903 = vmatprep.subr.mxu0 %v145_v3  ;;  %280 = vmatpush1.msra.mxu1 %v261_v9  ;;  %v140_v19 = vld [vmem:[#allocation5 + $0x38] sm:$0xff]  ;;  %v253_v21 = vld [vmem:[#allocation7 + $0xa0] sm:$0xff]  ;;  %v139_v22 = vld [vmem:[#allocation5 + $0x30] sm:$0xff] }
  0x5c   :  { %904 = vmatpush3.msra.mxu0 %v145_v3  ;;  %281 = vmatprep.subr.mxu1 %v260_v11  ;;  %v252_v23 = vld [vmem:[#allocation7 + $0x98] sm:$0xff]  ;;  %v251_v24 = vld [vmem:[#allocation7 + $0x90] sm:$0xff]  ;;  %v138_v25 = vld [vmem:[#allocation5 + $0x28] sm:$0xff] }
  0x5d   :  { %905 = vmatprep.subr.mxu0 %v144_v4  ;;  %282 = vmatpush1.msra.mxu1 %v259_v12  ;;  %v250_v26 = vld [vmem:[#allocation7 + $0x88] sm:$0xff]  ;;  %v249_v27 = vld [vmem:[#allocation7 + $0x80] sm:$0xff]  ;;  %v248_v29 = vld [vmem:[#allocation7 + $0x78] sm:$0xff] }
  0x5e   :  { %906 = vmatpush3.msra.mxu0 %v144_v4  ;;  %283 = vmatprep.subr.mxu1 %v258_v14  ;;  %v137_v28 = vld [vmem:[#allocation5 + $0x20] sm:$0xff]  ;;  %v247_v30 = vld [vmem:[#allocation7 + $0x70] sm:$0xff]  ;;  %v136_v31 = vld [vmem:[#allocation5 + $0x18] sm:$0xff] }
  0x5f   :  { %907 = vmatprep.subr.mxu0 %v143_v10  ;;  %284 = vmatpush1.msra.mxu1 %v257_v15  ;;  %v246_v32 = vld [vmem:[#allocation7 + $0x68] sm:$0xff]  ;;  %v245_v33 = vld [vmem:[#allocation7 + $0x60] sm:$0xff]  ;;  %v135_v34 = vld [vmem:[#allocation5 + $0x10] sm:$0xff] }
  0x60   :  { %908 = vmatpush3.msra.mxu0 %v143_v10  ;;  %285 = vmatprep.subr.mxu1 %v256_v17  ;;  %v244_v35 = vld [vmem:[#allocation7 + $0x58] sm:$0xff]  ;;  %v243_v36 = vld [vmem:[#allocation7 + $0x50] sm:$0xff]  ;;  %v134_v37 = vld [vmem:[#allocation5 + $0x8] sm:$0xff] }
  0x61   :  { %909 = vmatprep.subr.mxu0 %v142_v13  ;;  %286 = vmatpush1.msra.mxu1 %v255_v18  ;;  %v242_v38 = vld [vmem:[#allocation7 + $0x48] sm:$0xff]  ;;  %v241_v39 = vld [vmem:[#allocation7 + $0x40] sm:$0xff]  ;;  %v240_v41 = vld [vmem:[#allocation7 + $0x38] sm:$0xff] }
  0x62   :  { %910 = vmatpush3.msra.mxu0 %v142_v13  ;;  %287 = vmatprep.subr.mxu1 %v254_v20  ;;  %v133_v40 = vld [vmem:[#allocation5] sm:$0xff]  ;;  %v132_v42 = vld [vmem:[#allocation2 + $0x8] sm:$0xff]  ;;  %v239_v43 = vld [vmem:[#allocation7 + $0x30] sm:$0xff] }
  0x63   :  { %911 = vmatprep.subr.mxu0 %v141_v16  ;;  %288 = vmatpush1.msra.mxu1 %v253_v21  ;;  %v238_v44 = vld [vmem:[#allocation7 + $0x28] sm:$0xff]  ;;  %v237_v45 = vld [vmem:[#allocation7 + $0x20] sm:$0xff]  ;;  %v236_v46 = vld [vmem:[#allocation7 + $0x18] sm:$0xff] }
  0x64   :  { %912 = vmatpush3.msra.mxu0 %v141_v16  ;;  %289 = vmatprep.subr.mxu1 %v252_v23  ;;  %v235_v47 = vld [vmem:[#allocation7 + $0x10] sm:$0xff]  ;;  %v234_v48 = vld [vmem:[#allocation7 + $0x8] sm:$0xff]  ;;  %v233_v49 = vld [vmem:[#allocation7] sm:$0xff] }
  0x65   :  { %913 = vmatprep.subr.mxu0 %v140_v19  ;;  %290 = vmatpush1.msra.mxu1 %v251_v24  ;;  %v389_v51 = vld [vmem:[#allocation8 + $0xf8] sm:$0xff]  ;;  %v388_v53 = vld [vmem:[#allocation8 + $0xf0] sm:$0xff]  ;;  %v387_v55 = vld [vmem:[#allocation8 + $0xe8] sm:$0xff] }
  0x66   :  { %914 = vmatpush3.msra.mxu0 %v140_v19  ;;  %291 = vmatprep.subr.mxu1 %v250_v26  ;;  %v373_v52 = vld [vmem:[#allocation8 + $0x78] sm:$0xff]  ;;  %v372_v54 = vld [vmem:[#allocation8 + $0x70] sm:$0xff]  ;;  %v371_v56 = vld [vmem:[#allocation8 + $0x68] sm:$0xff]  ;;  %v267_v26 = vlaneseq }
  0x67   :  { %915 = vmatprep.subr.mxu0 %v139_v22  ;;  %292 = vmatpush1.msra.mxu1 %v249_v27  ;;  %v386_v57 = vld [vmem:[#allocation8 + $0xe0] sm:$0xff]  ;;  %v385_v59 = vld [vmem:[#allocation8 + $0xd8] sm:$0xff]  ;;  %v384_v61 = vld [vmem:[#allocation8 + $0xd0] sm:$0xff] }
  0x68   :  { %916 = vmatpush3.msra.mxu0 %v139_v22  ;;  %293 = vmatprep.subr.mxu1 %v248_v29  ;;  %v370_v58 = vld [vmem:[#allocation8 + $0x60] sm:$0xff]  ;;  %v369_v60 = vld [vmem:[#allocation8 + $0x58] sm:$0xff]  ;;  %v368_v62 = vld [vmem:[#allocation8 + $0x50] sm:$0xff]  ;;  %v268_v27 = vshrl.u32 %v267_v26, 7 }
  0x69   :  { %917 = vmatprep.subr.mxu0 %v138_v25  ;;  %294 = vmatpush1.msra.mxu1 %v247_v30  ;;  %v383_v63 = vld [vmem:[#allocation8 + $0xc8] sm:$0xff]  ;;  %v382_v1 = vld [vmem:[#allocation8 + $0xc0] sm:$0xff]  ;;  %v381_v3 = vld [vmem:[#allocation8 + $0xb8] sm:$0xff] }
  0x6a   :  { %918 = vmatpush3.msra.mxu0 %v138_v25  ;;  %295 = vmatprep.subr.mxu1 %v246_v32  ;;  %v367_v0 = vld [vmem:[#allocation8 + $0x48] sm:$0xff]  ;;  %v366_v2 = vld [vmem:[#allocation8 + $0x40] sm:$0xff]  ;;  %v365_v4 = vld [vmem:[#allocation8 + $0x38] sm:$0xff]  ;;  %v273_v30 = vsub.s32 1, %v268_v27 }
  0x6b   :  { %919 = vmatprep.subr.mxu0 %v137_v28  ;;  %296 = vmatpush1.msra.mxu1 %v245_v33  ;;  %v380_v5 = vld [vmem:[#allocation8 + $0xb0] sm:$0xff]  ;;  %v379_v7 = vld [vmem:[#allocation8 + $0xa8] sm:$0xff]  ;;  %v378_v9 = vld [vmem:[#allocation8 + $0xa0] sm:$0xff] }
  0x6c   :  { %920 = vmatpush3.msra.mxu0 %v137_v28  ;;  %297 = vmatprep.subr.mxu1 %v244_v35  ;;  %v364_v6 = vld [vmem:[#allocation8 + $0x30] sm:$0xff]  ;;  %v363_v8 = vld [vmem:[#allocation8 + $0x28] sm:$0xff]  ;;  %v362_v10 = vld [vmem:[#allocation8 + $0x20] sm:$0xff]  ;;  %v269_v28 = vsub.s32 0, %v268_v27 }
  0x6d   :  { %921 = vmatprep.subr.mxu0 %v136_v31  ;;  %298 = vmatpush1.msra.mxu1 %v243_v36  ;;  %v785_v12 = vld [vmem:[%s1360_s2] ss:$0 sm:$0xff]  ;;  %v377_v18 = vld [vmem:[#allocation8 + $0x98] sm:$0xff]  ;;  %v375_v22 = vld [vmem:[#allocation8 + $0x88] sm:$0xff] }
  0x6e   :  { %922 = vmatpush3.msra.mxu0 %v136_v31  ;;  %299 = vmatprep.subr.mxu1 %v242_v38  ;;  %v361_v19 = vld [vmem:[#allocation8 + $0x18] sm:$0xff]  ;;  %v376_v20 = vld [vmem:[#allocation8 + $0x90] sm:$0xff]  ;;  %v359_v23 = vld [vmem:[#allocation8 + $0x8] sm:$0xff] }
  0x6f   :  { %923 = vmatprep.subr.mxu0 %v135_v34  ;;  %300 = vmatpush1.msra.mxu1 %v241_v39  ;;  %v360_v21 = vld [vmem:[#allocation8 + $0x10] sm:$0xff]  ;;  %v374_v24 = vld [vmem:[#allocation8 + $0x80] sm:$0xff]  ;;  %v580_v26 = vld [vmem:[#allocation11 + $0x18] sm:$0xff] }
  0x70   :  { %924 = vmatpush3.msra.mxu0 %v135_v34  ;;  %301 = vmatprep.subr.mxu1 %v240_v41  ;;  %v358_v25 = vld [vmem:[#allocation8] sm:$0xff]  ;;  %v265_v29 = vld [vmem:[%s1362_s4] sm:$0x3] }
  0x71   :  { %925 = vmatprep.subr.mxu0 %v134_v37  ;;  %302 = vmatpush1.msra.mxu1 %v239_v43  ;;  %v270_v31 = vrot.slane %v265_v29, %v269_v28  ;;  %v274_v32 = vrot.slane %v265_v29, %v273_v30  ;;  %v579_v27 = vld [vmem:[#allocation11 + $0x10] sm:$0xff]  ;;  %v578_v28 = vld [vmem:[#allocation11 + $0x8] sm:$0xff]  ;;  %v577_v29 = vld [vmem:[#allocation11] sm:$0xff] }
  0x72   :  { %926 = vmatpush3.msra.mxu0 %v134_v37  ;;  %303 = vmatprep.subr.mxu1 %v238_v44  ;;  %v687_v30 = vld [vmem:[#allocation13 + $0x78] sm:$0xff] }
  0x73   :  { %927 = vmatprep.subr.mxu0 %v133_v40  ;;  %304 = vmatpush1.msra.mxu1 %v237_v45  ;;  %v497_v45 = vld [vmem:[#allocation10 + $0x78] sm:$0xff] }
  0x74   :  { %928 = vmatpush3.msra.mxu0 %v133_v40  ;;  %305 = vmatprep.subr.mxu1 %v236_v46  ;;  %v496_v46 = vld [vmem:[#allocation10 + $0x70] sm:$0xff] }
  0x75   :  { %930 = vmatmul.mubr.f32.vlgmr.msra.gmra.mxu0 %v132_v42  ;;  %306 = vmatpush1.msra.mxu1 %v235_v47  ;;  %v495_v47 = vld [vmem:[#allocation10 + $0x68] sm:$0xff] }
  0x76   :  { %307 = vmatprep.subr.mxu1 %v234_v48  ;;  %805 = vmatprep.subr.mxu0 %v389_v51  ;;  %v494_v48 = vld [vmem:[#allocation10 + $0x60] sm:$0xff] }
  0x77   :  { %308 = vmatpush1.msra.mxu1 %v233_v49  ;;  %806 = vmatpush3.msra.mxu0 %v373_v52  ;;  %v493_v49 = vld [vmem:[#allocation10 + $0x58] sm:$0xff]  ;;  %v786_v52 = vld [vmem:[%s1364_s6] ss:$0 sm:$0xff]  ;;  %s1240_s6 = smov [#allocation14]  }
  0x78   :  { %807 = vmatprep.subr.mxu0 %v388_v53  ;;  %932 = vmatprep.subr.mxu1 %v497_v45  ;;  %s770_s30 = sshll.u32 %s1240_s6, 4  ;;  %s771_s30 = int_to_ptr.vmem [resolvable:$true] %s770_s30 }
  0x79   :  { %808 = vmatpush3.msra.mxu0 %v372_v54  ;;  %s1198_s5 = scalar_lea.vmem %s771_s30, 256  ;;  %p1203_p8 = scmp.lt.s32.totalorder %s771_s30, %s771_s30 }
  0x7a   :  { %809 = vmatprep.subr.mxu0 %v387_v55  ;;  %p1199_p7 = scmp.ne.s32.totalorder %s771_s30, %s1198_s5  ;;  %p1204_p9 = scmp.lt.s32.totalorder %s1198_s5, %s1198_s5 }
  0x7b   :  { %810 = vmatpush3.msra.mxu0 %v371_v56 }
  0x7c   :  { %811 = vmatprep.subr.mxu0 %v386_v57  ;;  %p1205_p10 = por %p1204_p9, %p1203_p8 }
  0x7d   :  { %812 = vmatpush3.msra.mxu0 %v370_v58 }
  0x7e   :  { %813 = vmatprep.subr.mxu0 %v385_v59  ;;  %v492_v59 = vld [vmem:[#allocation10 + $0x50] sm:$0xff]  ;;  %p1206_p11 = pnand %p1205_p10, %p1199_p7 }
  0x7f   :  { %814 = vmatpush3.msra.mxu0 %v369_v60  ;;  %v491_v60 = vld [vmem:[#allocation10 + $0x48] sm:$0xff] }
  0x80   :  { %815 = vmatprep.subr.mxu0 %v384_v61  ;;  %v490_v61 = vld [vmem:[#allocation10 + $0x40] sm:$0xff] }
  0x81   :  { %816 = vmatpush3.msra.mxu0 %v368_v62  ;;  %v489_v62 = vld [vmem:[#allocation10 + $0x38] sm:$0xff] }
  0x82   :  { %817 = vmatprep.subr.mxu0 %v383_v63  ;;  %v488_v63 = vld [vmem:[#allocation10 + $0x30] sm:$0xff] }
  0x83   :  { %818 = vmatpush3.msra.mxu0 %v367_v0  ;;  %v487_v0 = vld [vmem:[#allocation10 + $0x28] sm:$0xff] }
  0x84   :  { %819 = vmatprep.subr.mxu0 %v382_v1  ;;  %v486_v1 = vld [vmem:[#allocation10 + $0x20] sm:$0xff] }
  0x85   :  { %820 = vmatpush3.msra.mxu0 %v366_v2  ;;  %v485_v2 = vld [vmem:[#allocation10 + $0x18] sm:$0xff] }
  0x86   :  { %821 = vmatprep.subr.mxu0 %v381_v3  ;;  %v484_v3 = vld [vmem:[#allocation10 + $0x10] sm:$0xff] }
  0x87   :  { %822 = vmatpush3.msra.mxu0 %v365_v4  ;;  %v483_v4 = vld [vmem:[#allocation10 + $0x8] sm:$0xff] }
  0x88   :  { %823 = vmatprep.subr.mxu0 %v380_v5  ;;  %v482_v5 = vld [vmem:[#allocation10] sm:$0xff] }
  0x89   :  { %824 = vmatpush3.msra.mxu0 %v364_v6  ;;  %v592_v6 = vld [vmem:[#allocation11 + $0x78] sm:$0xff] }
  0x8a   :  { %825 = vmatprep.subr.mxu0 %v379_v7  ;;  %v591_v7 = vld [vmem:[#allocation11 + $0x70] sm:$0xff] }
  0x8b   :  { %826 = vmatpush3.msra.mxu0 %v363_v8  ;;  %v590_v8 = vld [vmem:[#allocation11 + $0x68] sm:$0xff] }
  0x8c   :  { %827 = vmatprep.subr.mxu0 %v378_v9  ;;  %v589_v9 = vld [vmem:[#allocation11 + $0x60] sm:$0xff] }
  0x8d   :  { %828 = vmatpush3.msra.mxu0 %v362_v10  ;;  %v588_v10 = vld [vmem:[#allocation11 + $0x58] sm:$0xff] }
  0x8e   :  { %829 = vmatprep.subr.mxu0 %v377_v18 }
  0x8f   :  { %830 = vmatpush3.msra.mxu0 %v361_v19 }
  0x90   :  { %831 = vmatprep.subr.mxu0 %v376_v20  ;;  %v586_v20 = vld [vmem:[#allocation11 + $0x48] sm:$0xff] }
  0x91   :  { %832 = vmatpush3.msra.mxu0 %v360_v21  ;;  %v585_v21 = vld [vmem:[#allocation11 + $0x40] sm:$0xff] }
  0x92   :  { %833 = vmatprep.subr.mxu0 %v375_v22  ;;  %v584_v22 = vld [vmem:[#allocation11 + $0x38] sm:$0xff] }
  0x93   :  { %834 = vmatpush3.msra.mxu0 %v359_v23  ;;  %v583_v23 = vld [vmem:[#allocation11 + $0x30] sm:$0xff] }
  0x94   :  { %835 = vmatprep.subr.mxu0 %v374_v24  ;;  %v582_v24 = vld [vmem:[#allocation11 + $0x28] sm:$0xff] }
  0x95   :  { %836 = vmatpush3.msra.mxu0 %v358_v25  ;;  %v581_v25 = vld [vmem:[#allocation11 + $0x20] sm:$0xff] }
  0x96   :  { %967 = vmatprep.subr.mxu0 %v592_v6 }
 0x135   :  { %v931_v11 = vpop.f32.mrf.mxu0 }
 0x136   :  { %v228_v15 = vadd.f32 %v931_v11, %v785_v12  ;;  %v587_v11 = vld [vmem:[#allocation11 + $0x50] sm:$0xff] }
 0x137   :  { %v222_v13 = vpop.f32.mrf.mxu0 }
 0x138   :  { %v223_v14 = vadd.f32 %v785_v12, %v222_v13  ;;  %v232_v17 = vmax.f32 %v228_v15, 0.0 }
 0x13a   :  { %v231_v16 = vmax.f32 %v223_v14, 0.0 }
 0x13c   :  { %342 = vmatmul.mubr.f32.vlgmr.msra.gmra.mxu1 %v231_v16 }
 0x13d   :  { %347 = vmatprep.mubr.f32.mxu1 %v1239_v50  ;;  %933 = vmatpush3.msra.mxu1 %v497_v45 }
 0x13e   :  { %934 = vmatprep.subr.mxu1 %v496_v46 }
 0x13f   :  { %935 = vmatpush3.msra.mxu1 %v496_v46 }
 0x140   :  { %348 = vmatmul.mubr.f32.gmra.mxu1 %v232_v17  ;;  %936 = vmatprep.subr.mxu1 %v495_v47 }
 0x141   :  { %937 = vmatpush3.msra.mxu1 %v495_v47 }
 0x142   :  { %938 = vmatprep.subr.mxu1 %v494_v48 }
 0x143   :  { %939 = vmatpush3.msra.mxu1 %v494_v48  ;;  %v675_v48 = vld [vmem:[#allocation13 + $0x18] sm:$0xff] }
 0x144   :  { %940 = vmatprep.subr.mxu1 %v493_v49 }
 0x145   :  { %941 = vmatpush3.msra.mxu1 %v493_v49  ;;  %v674_v49 = vld [vmem:[#allocation13 + $0x10] sm:$0xff] }
 0x146   :  { %942 = vmatprep.subr.mxu1 %v492_v59 }
 0x147   :  { %943 = vmatpush3.msra.mxu1 %v492_v59 }
 0x148   :  { %944 = vmatprep.subr.mxu1 %v491_v60 }
 0x149   :  { %945 = vmatpush3.msra.mxu1 %v491_v60 }
 0x14a   :  { %946 = vmatprep.subr.mxu1 %v490_v61 }
 0x14b   :  { %947 = vmatpush3.msra.mxu1 %v490_v61 }
 0x14c   :  { %948 = vmatprep.subr.mxu1 %v489_v62 }
 0x14d   :  { %949 = vmatpush3.msra.mxu1 %v489_v62 }
 0x14e   :  { %950 = vmatprep.subr.mxu1 %v488_v63 }
 0x14f   :  { %951 = vmatpush3.msra.mxu1 %v488_v63 }
 0x150   :  { %952 = vmatprep.subr.mxu1 %v487_v0 }
 0x151   :  { %953 = vmatpush3.msra.mxu1 %v487_v0 }
 0x152   :  { %954 = vmatprep.subr.mxu1 %v486_v1 }
 0x153   :  { %955 = vmatpush3.msra.mxu1 %v486_v1 }
 0x154   :  { %956 = vmatprep.subr.mxu1 %v485_v2 }
 0x155   :  { %957 = vmatpush3.msra.mxu1 %v485_v2 }
 0x156   :  { %958 = vmatprep.subr.mxu1 %v484_v3 }
 0x157   :  { %959 = vmatpush3.msra.mxu1 %v484_v3 }
 0x158   :  { %960 = vmatprep.subr.mxu1 %v483_v4 }
 0x159   :  { %961 = vmatpush3.msra.mxu1 %v483_v4 }
 0x15a   :  { %962 = vmatprep.subr.mxu1 %v482_v5 }
 0x15b   :  { %963 = vmatpush3.msra.mxu1 %v482_v5 }
 0x15c   :  { %1002 = vmatprep.subr.mxu1 %v687_v30 }
 0x1fc   :  { %v343_v33 = vpop.f32.mrf.mxu1 }
 0x1fd   :  { %v344_v34 = vadd.f32 %v343_v33, %v270_v31  ;;  %v684_v33 = vld [vmem:[#allocation13 + $0x60] sm:$0xff] }
 0x1fe   :  { %v345_v35 = vpop.f32.mrf.mxu1 }
 0x1ff   :  { %v346_v36 = vadd.f32 %v345_v35, %v274_v32  ;;  %v354_v39 = vmax.f32 %v344_v34, 0.0  ;;  %v683_v34 = vld [vmem:[#allocation13 + $0x58] sm:$0xff]  ;;  %v682_v35 = vld [vmem:[#allocation13 + $0x50] sm:$0xff] }
 0x200   :  { %v349_v37 = vpop.f32.mrf.mxu1 }
 0x201   :  { %v355_v38 = vmax.f32 %v346_v36, 0.0  ;;  %v350_v40 = vadd.f32 %v349_v37, %v270_v31  ;;  %v686_v31 = vld [vmem:[#allocation13 + $0x70] sm:$0xff]  ;;  %v681_v36 = vld [vmem:[#allocation13 + $0x48] sm:$0xff]  ;;  %v680_v37 = vld [vmem:[#allocation13 + $0x40] sm:$0xff] }
 0x202   :  { %v351_v41 = vpop.f32.mrf.mxu1 }
 0x203   :  { %v352_v42 = vadd.f32 %v351_v41, %v274_v32  ;;  %461 = vmatprep.mubr.f32.mxu0 %v355_v38  ;;  %v356_v44 = vmax.f32 %v350_v40, 0.0  ;;  %v685_v32 = vld [vmem:[#allocation13 + $0x68] sm:$0xff]  ;;  %v679_v38 = vld [vmem:[#allocation13 + $0x38] sm:$0xff]  ;;  %v676_v41 = vld [vmem:[#allocation13 + $0x20] sm:$0xff] }
 0x204   :  { %462 = vmatmul.mubr.f32.vlgmr.msra.gmra.mxu0 %v354_v39  ;;  %v678_v39 = vld [vmem:[#allocation13 + $0x30] sm:$0xff]  ;;  %v677_v40 = vld [vmem:[#allocation13 + $0x28] sm:$0xff] }
 0x205   :  { %v357_v43 = vmax.f32 %v352_v42, 0.0  ;;  %968 = vmatpush3.msra.mxu0 %v592_v6 }
 0x206   :  { %969 = vmatprep.subr.mxu0 %v591_v7 }
 0x207   :  { %466 = vmatprep.mubr.f32.mxu0 %v357_v43  ;;  %970 = vmatpush3.msra.mxu0 %v591_v7 }
 0x208   :  { %467 = vmatmul.mubr.f32.gmra.mxu0 %v356_v44  ;;  %971 = vmatprep.subr.mxu0 %v590_v8 }
 0x209   :  { %972 = vmatpush3.msra.mxu0 %v590_v8 }
 0x20a   :  { %973 = vmatprep.subr.mxu0 %v589_v9 }
 0x20b   :  { %974 = vmatpush3.msra.mxu0 %v589_v9 }
 0x20c   :  { %975 = vmatprep.subr.mxu0 %v588_v10 }
 0x20d   :  { %976 = vmatpush3.msra.mxu0 %v588_v10 }
 0x20e   :  { %977 = vmatprep.subr.mxu0 %v587_v11 }
 0x20f   :  { %978 = vmatpush3.msra.mxu0 %v587_v11 }
 0x210   :  { %979 = vmatprep.subr.mxu0 %v586_v20 }
 0x211   :  { %980 = vmatpush3.msra.mxu0 %v586_v20 }
 0x212   :  { %981 = vmatprep.subr.mxu0 %v585_v21 }
 0x213   :  { %982 = vmatpush3.msra.mxu0 %v585_v21 }
 0x214   :  { %983 = vmatprep.subr.mxu0 %v584_v22 }
 0x215   :  { %984 = vmatpush3.msra.mxu0 %v584_v22 }
 0x216   :  { %985 = vmatprep.subr.mxu0 %v583_v23 }
 0x217   :  { %986 = vmatpush3.msra.mxu0 %v583_v23 }
 0x218   :  { %987 = vmatprep.subr.mxu0 %v582_v24 }
 0x219   :  { %988 = vmatpush3.msra.mxu0 %v582_v24 }
 0x21a   :  { %989 = vmatprep.subr.mxu0 %v581_v25 }
 0x21b   :  { %990 = vmatpush3.msra.mxu0 %v581_v25 }
 0x21c   :  { %991 = vmatprep.subr.mxu0 %v580_v26 }
 0x21d   :  { %992 = vmatpush3.msra.mxu0 %v580_v26 }
 0x21e   :  { %993 = vmatprep.subr.mxu0 %v579_v27 }
 0x21f   :  { %994 = vmatpush3.msra.mxu0 %v579_v27 }
 0x220   :  { %995 = vmatprep.subr.mxu0 %v578_v28 }
 0x221   :  { %996 = vmatpush3.msra.mxu0 %v578_v28 }
 0x222   :  { %997 = vmatprep.subr.mxu0 %v577_v29 }
 0x223   :  { %998 = vmatpush3.msra.mxu0 %v577_v29 }
 0x2c4   :  { %v837_v50 = vpop.f32.mrf.mxu0 }
 0x2c6   :  { %v838_v51 = vpop.f32.mrf.mxu0 }
 0x2c7   :  { %v839_v53 = vadd.f32 %v838_v51, %v837_v50  ;;  %v673_v50 = vld [vmem:[#allocation13 + $0x8] sm:$0xff]  ;;  %v672_v51 = vld [vmem:[#allocation13] sm:$0xff] }
 0x2c8   :  { %v840_v54 = vpop.f32.mrf.mxu0 }
 0x2c9   :  { %v464_v55 = vadd.f32 %v839_v53, %v786_v52 }
 0x2ca   :  { %v841_v56 = vpop.f32.mrf.mxu0 }
 0x2cb   :  { %v842_v57 = vadd.f32 %v841_v56, %v840_v54  ;;  %472 = vmax.xlane.f32.xlu0 %v464_v55 }
 0x2cd   :  { %v469_v58 = vadd.f32 %v842_v57, %v786_v52 }
 0x2cf   :  { %474 = vmax.xlane.f32.xlu0 %v469_v58 }
 0x354   :  { %v473_v12 = vpop.xlane.xlu0 %472 }
 0x355   :  { %v476_v13 = vsub.f32 %v464_v55, %v473_v12 }
 0x357   :  { %v478_v14 = vmul.f32 1.442695, %v476_v13 }
 0x358   :  { %v475_v15 = vpop.xlane.xlu0 %474 }
 0x359   :  { %1050 = vpow2.f32 %v478_v14  ;;  %v477_v16 = vsub.f32 %v469_v58, %v475_v15 }
 0x35b   :  { %v480_v17 = vmul.f32 1.442695, %v477_v16 }
 0x35d   :  { %1052 = vpow2.f32 %v480_v17 }
 0x366   :  { %v1344_v18 = vpop.eup %1050 }
 0x367   :  { %964 = vmatprep.mubr.f32.mxu1 %v1344_v18 }
 0x36a   :  { %v1347_v19 = vpop.eup %1052 }
 0x36b   :  { %965 = vmatmul.mubr.f32.vlgmr.msra.gmra.mxu1 %v1347_v19 }
 0x36c   :  { %1003 = vmatpush3.msra.mxu1 %v687_v30 }
 0x36d   :  { %1004 = vmatprep.subr.mxu1 %v686_v31 }
 0x36e   :  { %1005 = vmatpush3.msra.mxu1 %v686_v31 }
 0x36f   :  { %1006 = vmatprep.subr.mxu1 %v685_v32 }
 0x370   :  { %1007 = vmatpush3.msra.mxu1 %v685_v32 }
 0x371   :  { %1008 = vmatprep.subr.mxu1 %v684_v33 }
 0x372   :  { %1009 = vmatpush3.msra.mxu1 %v684_v33 }
 0x373   :  { %1010 = vmatprep.subr.mxu1 %v683_v34 }
 0x374   :  { %1011 = vmatpush3.msra.mxu1 %v683_v34 }
 0x375   :  { %1012 = vmatprep.subr.mxu1 %v682_v35 }
 0x376   :  { %1013 = vmatpush3.msra.mxu1 %v682_v35 }
 0x377   :  { %1014 = vmatprep.subr.mxu1 %v681_v36 }
 0x378   :  { %1015 = vmatpush3.msra.mxu1 %v681_v36 }
 0x379   :  { %1016 = vmatprep.subr.mxu1 %v680_v37 }
 0x37a   :  { %1017 = vmatpush3.msra.mxu1 %v680_v37 }
 0x37b   :  { %1018 = vmatprep.subr.mxu1 %v679_v38 }
 0x37c   :  { %1019 = vmatpush3.msra.mxu1 %v679_v38 }
 0x37d   :  { %1020 = vmatprep.subr.mxu1 %v678_v39 }
 0x37e   :  { %1021 = vmatpush3.msra.mxu1 %v678_v39 }
 0x37f   :  { %1022 = vmatprep.subr.mxu1 %v677_v40 }
 0x380   :  { %1023 = vmatpush3.msra.mxu1 %v677_v40 }
 0x381   :  { %1024 = vmatprep.subr.mxu1 %v676_v41 }
 0x382   :  { %1025 = vmatpush3.msra.mxu1 %v676_v41 }
 0x383   :  { %1026 = vmatprep.subr.mxu1 %v675_v48 }
 0x384   :  { %1027 = vmatpush3.msra.mxu1 %v675_v48 }
 0x385   :  { %1028 = vmatprep.subr.mxu1 %v674_v49 }
 0x386   :  { %1029 = vmatpush3.msra.mxu1 %v674_v49 }
 0x387   :  { %1030 = vmatprep.subr.mxu1 %v673_v50 }
 0x388   :  { %1031 = vmatpush3.msra.mxu1 %v673_v50 }
 0x389   :  { %1032 = vmatprep.subr.mxu1 %v672_v51 }
 0x38a   :  { %1033 = vmatpush3.msra.mxu1 %v672_v51 }
 0x42b   :  { %v966_v42 = vpop.f32.mrf.mxu1 }
 0x42c   :  { %v574_v43 = vmax.f32 %v966_v42, 1e-12 }
 0x42d   :  { %v564_v44 = vpop.f32.mrf.mxu1 }
 0x42e   :  { %v573_v45 = vmax.f32 %v564_v44, 1e-12 }
 0x430   :  { %1054 = vrcp.f32 %v573_v45 }
 0x431   :  { %1056 = vrcp.f32 %v574_v43 }
 0x43d   :  { %v1055_v46 = vpop.eup %1054 }
 0x43e   :  { %v1057_v47 = vpop.eup %1056  ;;  %999 = vmatprep.mubr.f32.mxu0 %v1055_v46 }
 0x43f   :  { %1000 = vmatmul.mubr.f32.vlgmr.msra.gmra.mxu0 %v1057_v47 }
 0x4ff   :  { %v1001_v52 = vpop.f32.mrf.mxu0 }
 0x500   :  { %v669_v53 = vmul.f32 %v1347_v19, %v1001_v52 }
 0x501   :  { %v659_v54 = vpop.f32.mrf.mxu0 }
 0x502   :  { %v668_v55 = vmul.f32 %v1344_v18, %v659_v54  ;;  %v671_v57 = vmax.f32 %v669_v53, 0.001 }
 0x504   :  { %v670_v56 = vmax.f32 %v668_v55, 0.001 }
 0x506   :  { %1034 = vmatprep.mubr.f32.mxu1 %v670_v56 }
 0x507   :  { %1035 = vmatmul.mubr.f32.vlgmr.msra.gmra.mxu1 %v671_v57 }
 0x5c7   :  { %v1036_v58 = vpop.f32.mrf.mxu1 }
 0x5c8   :  { %764 = vst [vmem:[#allocation14 + $0x8] sm:$0xff] %v1036_v58 }
 0x5c9   :  { %v754_v59 = vpop.f32.mrf.mxu1 }
 0x5ca   :  { %763 = vst [vmem:[#allocation14] sm:$0xff] %v754_v59 }
 0x5cb   :  { %1209 = shalt.err (!%p1206_p11)
}
 0x5cc   :  { %776 = dma.vmem_to_hbm [thread:$0]  %s771_s30, 256, %s1368_s10, [#allocation4], %s1230_s18, %s1230_s18, %s1231_s19  }
 0x5cd   :  { %1226 = dma.done.wait [#allocation4], 256  }
 0x5ce   :  { %1227 = vsyncadd [#allocation4], 4294967040 }
 0x5cf   :  { %780 = vsyncpa [#allocation3], 1 }
 0x5d0   :  { %781 = vsyncpa [#allocation6], 1 }
 0x5d1   :  { %782 = vsyncpa [#allocation9], 1 }
 0x5d2   :  { %783 = vsyncpa [#allocation12], 1 }
 0x5d3   :  { %784 = vsyncpa [#allocation4], 1 }

// kernel: tpu_custom_call.1
= control target key start
LH: loop header
LB: loop body
LE: loop exit
PB: predicated region body
PF: predicated region fallthrough
CT: control target
= control target key end

     0   :  { %15 = vsyncpa [#allocation3], 0  ;;  %s1358_s0 = inlined_call_operand.hbm [shape: f32[16,128], index: 0, kind: input, shape index: {}]   ;;  %s1359_s1 = inlined_call_operand.hbm [shape: f32[128,128], index: 1, kind: input, shape index: {}]   ;;  %s1360_s2 = inlined_call_operand.vmem [shape: f32[1,128], index: 2, kind: input, shape index: {}]   ;;  %s1361_s3 = inlined_call_operand.hbm [shape: f32[128,256], index: 3, kind: input, shape index: {}]   ;;  %s1362_s4 = inlined_call_operand.vmem [shape: f32[1,256], index: 4, kind: input, shape index: {}]   ;;  %s1363_s5 = inlined_call_operand.hbm [shape: f32[256,128], index: 5, kind: input, shape index: {}]   ;;  %s1364_s6 = inlined_call_operand.vmem [shape: f32[1,128], index: 6, kind: input, shape index: {}]   ;;  %s1365_s7 = inlined_call_operand.hbm [shape: f32[128,128], index: 7, kind: input, shape index: {}]   ;;  %s1366_s8 = inlined_call_operand.hbm [shape: f32[128,128], index: 8, kind: input, shape index: {}]   ;;  %s1367_s9 = inlined_call_operand.hbm [shape: f32[128,128], index: 9, kind: input, shape index: {}]   ;;  %s1368_s10 = inlined_call_operand.hbm [shape: f32[16,128], index: 10, kind: output, shape index: {}]  }
   0x1   :  { %16 = vsyncpa [#allocation6], 0 }
   0x2   :  { %17 = vsyncpa [#allocation9], 0 }
   0x3   :  { %18 = vsyncpa [#allocation12], 0 }
   0x4   :  { %19 = vsyncpa [#allocation4], 0  ;;  %s1228_s13 = smov [#allocation5]   ;;  %s1229_s15 = smov [#allocation8]  }
   0x5   :  { %s37_s14 = sshll.u32 %s1228_s13, 4  ;;  %s65_s16 = sshll.u32 %s1229_s15, 4  ;;  %s38_s14 = int_to_ptr.vmem [resolvable:$true] %s37_s14  ;;  %s66_s16 = int_to_ptr.vmem [resolvable:$true] %s65_s16 }
   0x6   :  { %s1066_s17 = scalar_lea.vmem %s38_s14, 2048  ;;  %p1071_p1 = scmp.lt.s32.totalorder %s38_s14, %s38_s14 }
   0x7   :  { %p1067_p0 = scmp.ne.s32.totalorder %s38_s14, %s1066_s17  ;;  %p1072_p2 = scmp.lt.s32.totalorder %s1066_s17, %s1066_s17 }
   0x9   :  { %p1073_p3 = por %p1072_p2, %p1071_p1 }
   0xb   :  { %p1074_p4 = pnand %p1073_p3, %p1067_p0 }
   0xd   :  { %1077 = shalt.err (!%p1074_p4)
}
   0xe   :  { %s1230_s18 = smov 128   ;;  %s1231_s19 = smov 8  }
   0xf   :  { %43 = dma.hbm_to_vmem [thread:$0]  %s1359_s1, 2048, %s38_s14, [#allocation6], %s1230_s18, %s1230_s18, %s1231_s19  }
  0x10   :  { %s1086_s22 = scalar_lea.vmem %s66_s16, 4096  ;;  %p1091_p6 = scmp.lt.s32.totalorder %s66_s16, %s66_s16 }
  0x11   :  { %p1087_p5 = scmp.ne.s32.totalorder %s66_s16, %s1086_s22  ;;  %p1092_p7 = scmp.lt.s32.totalorder %s1086_s22, %s1086_s22 }
  0x13   :  { %p1093_p8 = por %p1092_p7, %p1091_p6 }
  0x15   :  { %p1094_p9 = pnand %p1093_p8, %p1087_p5 }
  0x17   :  { %1097 = shalt.err (!%p1094_p9)
}
  0x18   :  { %71 = dma.hbm_to_vmem [thread:$0]  %s1363_s5, 4096, %s66_s16, [#allocation9], %s1230_s18, %s1230_s18, %s1231_s19  }
  0x19   :  { %s1232_s25 = smov [#allocation11]   ;;  %s1233_s27 = smov [#allocation2]  }
  0x1a   :  { %s91_s26 = sshll.u32 %s1232_s25, 4  ;;  %s25_s28 = sshll.u32 %s1233_s27, 4  ;;  %s92_s26 = int_to_ptr.vmem [resolvable:$true] %s91_s26  ;;  %s26_s28 = int_to_ptr.vmem [resolvable:$true] %s25_s28 }
  0x1b   :  { %s1106_s1 = scalar_lea.vmem %s92_s26, 2048  ;;  %p1111_p11 = scmp.lt.s32.totalorder %s92_s26, %s92_s26 }
  0x1c   :  { %p1107_p10 = scmp.ne.s32.totalorder %s92_s26, %s1106_s1  ;;  %p1112_p12 = scmp.lt.s32.totalorder %s1106_s1, %s1106_s1 }
  0x1e   :  { %p1113_p13 = por %p1112_p12, %p1111_p11 }
  0x20   :  { %p1114_p0 = pnand %p1113_p13, %p1107_p10 }
  0x22   :  { %1117 = shalt.err (!%p1114_p0)
}
  0x23   :  { %97 = dma.hbm_to_vmem [thread:$0]  %s1366_s8, 2048, %s92_s26, [#allocation12], %s1230_s18, %s1230_s18, %s1231_s19  }
  0x24   :  { %s1126_s5 = scalar_lea.vmem %s26_s28, 256  ;;  %p1131_p2 = scmp.lt.s32.totalorder %s26_s28, %s26_s28 }
  0x25   :  { %p1127_p1 = scmp.ne.s32.totalorder %s26_s28, %s1126_s5  ;;  %p1132_p3 = scmp.lt.s32.totalorder %s1126_s5, %s1126_s5 }
  0x27   :  { %p1133_p4 = por %p1132_p3, %p1131_p2 }
  0x29   :  { %p1134_p5 = pnand %p1133_p4, %p1127_p1 }
  0x2b   :  { %1137 = shalt.err (!%p1134_p5)
}
  0x2c   :  { %31 = dma.hbm_to_vmem [thread:$0]  %s1358_s0, 256, %s26_s28, [#allocation3], %s1230_s18, %s1230_s18, %s1231_s19  }
  0x2d   :  { %s1234_s13 = smov [#allocation7]  }
  0x2e   :  { %s51_s14 = sshll.u32 %s1234_s13, 4  ;;  %s52_s14 = int_to_ptr.vmem [resolvable:$true] %s51_s14 }
  0x2f   :  { %s1146_s15 = scalar_lea.vmem %s52_s14, 4096  ;;  %p1151_p7 = scmp.lt.s32.totalorder %s52_s14, %s52_s14 }
  0x30   :  { %p1147_p6 = scmp.ne.s32.totalorder %s52_s14, %s1146_s15  ;;  %p1152_p8 = scmp.lt.s32.totalorder %s1146_s15, %s1146_s15 }
  0x32   :  { %p1153_p9 = por %p1152_p8, %p1151_p7 }
  0x34   :  { %p1154_p10 = pnand %p1153_p9, %p1147_p6 }
  0x36   :  { %1157 = shalt.err (!%p1154_p10)
}
  0x37   :  { %s1235_s8 = smov 256   ;;  %s1236_s16 = smov 16  }
  0x38   :  { %57 = dma.hbm_to_vmem [thread:$0]  %s1361_s3, 4096, %s52_s14, [#allocation6], %s1235_s8, %s1235_s8, %s1236_s16  }
  0x39   :  { %s1237_s21 = smov [#allocation10]   ;;  %s1238_s0 = smov [#allocation13]  }
  0x3a   :  { %s79_s22 = sshll.u32 %s1237_s21, 4  ;;  %s103_s23 = sshll.u32 %s1238_s0, 4  ;;  %s80_s22 = int_to_ptr.vmem [resolvable:$true] %s79_s22  ;;  %s104_s23 = int_to_ptr.vmem [resolvable:$true] %s103_s23 }
  0x3b   :  { %s1166_s24 = scalar_lea.vmem %s80_s22, 2048  ;;  %p1171_p12 = scmp.lt.s32.totalorder %s80_s22, %s80_s22 }
  0x3c   :  { %p1167_p11 = scmp.ne.s32.totalorder %s80_s22, %s1166_s24  ;;  %p1172_p13 = scmp.lt.s32.totalorder %s1166_s24, %s1166_s24 }
  0x3e   :  { %p1173_p0 = por %p1172_p13, %p1171_p12 }
  0x40   :  { %p1174_p1 = pnand %p1173_p0, %p1167_p11 }
  0x42   :  { %1177 = shalt.err (!%p1174_p1)
}
  0x43   :  { %85 = dma.hbm_to_vmem [thread:$0]  %s1365_s7, 2048, %s80_s22, [#allocation9], %s1230_s18, %s1230_s18, %s1231_s19  }
  0x44   :  { %s1186_s3 = scalar_lea.vmem %s104_s23, 2048  ;;  %p1191_p3 = scmp.lt.s32.totalorder %s104_s23, %s104_s23 }
  0x45   :  { %p1187_p2 = scmp.ne.s32.totalorder %s104_s23, %s1186_s3  ;;  %p1192_p4 = scmp.lt.s32.totalorder %s1186_s3, %s1186_s3 }
  0x47   :  { %p1193_p5 = por %p1192_p4, %p1191_p3 }
  0x49   :  { %p1194_p6 = pnand %p1193_p5, %p1187_p2 }
  0x4b   :  { %1197 = shalt.err (!%p1194_p6)
}
  0x4c   :  { %109 = dma.hbm_to_vmem [thread:$0]  %s1367_s9, 2048, %s104_s23, [#allocation12], %s1230_s18, %s1230_s18, %s1231_s19  }
  0x4d   :  { %1218 = dma.done.wait [#allocation3], 256  }
  0x4e   :  { %1219 = vsyncadd [#allocation3], 4294967040 }
  0x4f   :  { %1220 = dma.done.wait [#allocation6], 6144  }
  0x50   :  { %1221 = vsyncadd [#allocation6], 4294961152 }
  0x51   :  { %1222 = dma.done.wait [#allocation9], 6144  }
  0x52   :  { %1223 = vsyncadd [#allocation9], 4294961152 }
  0x53   :  { %1224 = dma.done.wait [#allocation12], 4096  }
  0x54   :  { %1225 = vsyncadd [#allocation12], 4294963200  ;;  %v148_v0 = vld [vmem:[#allocation5 + $0x78] sm:$0xff]  ;;  %v147_v1 = vld [vmem:[#allocation5 + $0x70] sm:$0xff]  ;;  %v1239_v50 = vmov 0.0  }
  0x55   :  { %897 = vmatprep.subr.mxu0 %v148_v0  ;;  %v146_v2 = vld [vmem:[#allocation5 + $0x68] sm:$0xff]  ;;  %v145_v3 = vld [vmem:[#allocation5 + $0x60] sm:$0xff]  ;;  %v144_v4 = vld [vmem:[#allocation5 + $0x58] sm:$0xff]  ;;  %341 = vmatprep.mubr.f32.mxu1 %v1239_v50 }
  0x56   :  { %898 = vmatpush3.msra.mxu0 %v148_v0  ;;  %v131_v5 = vld [vmem:[#allocation2] sm:$0xff]  ;;  %v264_v6 = vld [vmem:[#allocation7 + $0xf8] sm:$0xff]  ;;  %v262_v8 = vld [vmem:[#allocation7 + $0xe8] sm:$0xff] }
  0x57   :  { %899 = vmatprep.subr.mxu0 %v147_v1  ;;  %929 = vmatprep.mubr.f32.mxu0 %v131_v5  ;;  %v263_v7 = vld [vmem:[#allocation7 + $0xf0] sm:$0xff]  ;;  %v261_v9 = vld [vmem:[#allocation7 + $0xe0] sm:$0xff]  ;;  %v260_v11 = vld [vmem:[#allocation7 + $0xd8] sm:$0xff] }
  0x58   :  { %900 = vmatpush3.msra.mxu0 %v147_v1  ;;  %277 = vmatprep.subr.mxu1 %v264_v6  ;;  %v143_v10 = vld [vmem:[#allocation5 + $0x50] sm:$0xff]  ;;  %v142_v13 = vld [vmem:[#allocation5 + $0x48] sm:$0xff]  ;;  %v257_v15 = vld [vmem:[#allocation7 + $0xc0] sm:$0xff] }
  0x59   :  { %901 = vmatprep.subr.mxu0 %v146_v2  ;;  %278 = vmatpush1.msra.mxu1 %v263_v7  ;;  %v259_v12 = vld [vmem:[#allocation7 + $0xd0] sm:$0xff]  ;;  %v258_v14 = vld [vmem:[#allocation7 + $0xc8] sm:$0xff]  ;;  %v141_v16 = vld [vmem:[#allocation5 + $0x40] sm:$0xff] }
  0x5a   :  { %902 = vmatpush3.msra.mxu0 %v146_v2  ;;  %279 = vmatprep.subr.mxu1 %v262_v8  ;;  %v256_v17 = vld [vmem:[#allocation7 + $0xb8] sm:$0xff]  ;;  %v255_v18 = vld [vmem:[#allocation7 + $0xb0] sm:$0xff]  ;;  %v254_v20 = vld [vmem:[#allocation7 + $0xa8] sm:$0xff] }
  0x5b   :  { %903 = vmatprep.subr.mxu0 %v145_v3  ;;  %280 = vmatpush1.msra.mxu1 %v261_v9  ;;  %v140_v19 = vld [vmem:[#allocation5 + $0x38] sm:$0xff]  ;;  %v253_v21 = vld [vmem:[#allocation7 + $0xa0] sm:$0xff]  ;;  %v139_v22 = vld [vmem:[#allocation5 + $0x30] sm:$0xff] }
  0x5c   :  { %904 = vmatpush3.msra.mxu0 %v145_v3  ;;  %281 = vmatprep.subr.mxu1 %v260_v11  ;;  %v252_v23 = vld [vmem:[#allocation7 + $0x98] sm:$0xff]  ;;  %v251_v24 = vld [vmem:[#allocation7 + $0x90] sm:$0xff]  ;;  %v138_v25 = vld [vmem:[#allocation5 + $0x28] sm:$0xff] }
  0x5d   :  { %905 = vmatprep.subr.mxu0 %v144_v4  ;;  %282 = vmatpush1.msra.mxu1 %v259_v12  ;;  %v250_v26 = vld [vmem:[#allocation7 + $0x88] sm:$0xff]  ;;  %v249_v27 = vld [vmem:[#allocation7 + $0x80] sm:$0xff]  ;;  %v248_v29 = vld [vmem:[#allocation7 + $0x78] sm:$0xff] }
  0x5e   :  { %906 = vmatpush3.msra.mxu0 %v144_v4  ;;  %283 = vmatprep.subr.mxu1 %v258_v14  ;;  %v137_v28 = vld [vmem:[#allocation5 + $0x20] sm:$0xff]  ;;  %v247_v30 = vld [vmem:[#allocation7 + $0x70] sm:$0xff]  ;;  %v136_v31 = vld [vmem:[#allocation5 + $0x18] sm:$0xff] }
  0x5f   :  { %907 = vmatprep.subr.mxu0 %v143_v10  ;;  %284 = vmatpush1.msra.mxu1 %v257_v15  ;;  %v246_v32 = vld [vmem:[#allocation7 + $0x68] sm:$0xff]  ;;  %v245_v33 = vld [vmem:[#allocation7 + $0x60] sm:$0xff]  ;;  %v135_v34 = vld [vmem:[#allocation5 + $0x10] sm:$0xff] }
  0x60   :  { %908 = vmatpush3.msra.mxu0 %v143_v10  ;;  %285 = vmatprep.subr.mxu1 %v256_v17  ;;  %v244_v35 = vld [vmem:[#allocation7 + $0x58] sm:$0xff]  ;;  %v243_v36 = vld [vmem:[#allocation7 + $0x50] sm:$0xff]  ;;  %v134_v37 = vld [vmem:[#allocation5 + $0x8] sm:$0xff] }
  0x61   :  { %909 = vmatprep.subr.mxu0 %v142_v13  ;;  %286 = vmatpush1.msra.mxu1 %v255_v18  ;;  %v242_v38 = vld [vmem:[#allocation7 + $0x48] sm:$0xff]  ;;  %v241_v39 = vld [vmem:[#allocation7 + $0x40] sm:$0xff]  ;;  %v240_v41 = vld [vmem:[#allocation7 + $0x38] sm:$0xff] }
  0x62   :  { %910 = vmatpush3.msra.mxu0 %v142_v13  ;;  %287 = vmatprep.subr.mxu1 %v254_v20  ;;  %v133_v40 = vld [vmem:[#allocation5] sm:$0xff]  ;;  %v132_v42 = vld [vmem:[#allocation2 + $0x8] sm:$0xff]  ;;  %v239_v43 = vld [vmem:[#allocation7 + $0x30] sm:$0xff] }
  0x63   :  { %911 = vmatprep.subr.mxu0 %v141_v16  ;;  %288 = vmatpush1.msra.mxu1 %v253_v21  ;;  %v238_v44 = vld [vmem:[#allocation7 + $0x28] sm:$0xff]  ;;  %v237_v45 = vld [vmem:[#allocation7 + $0x20] sm:$0xff]  ;;  %v236_v46 = vld [vmem:[#allocation7 + $0x18] sm:$0xff] }
  0x64   :  { %912 = vmatpush3.msra.mxu0 %v141_v16  ;;  %289 = vmatprep.subr.mxu1 %v252_v23  ;;  %v235_v47 = vld [vmem:[#allocation7 + $0x10] sm:$0xff]  ;;  %v234_v48 = vld [vmem:[#allocation7 + $0x8] sm:$0xff]  ;;  %v233_v49 = vld [vmem:[#allocation7] sm:$0xff] }
  0x65   :  { %913 = vmatprep.subr.mxu0 %v140_v19  ;;  %290 = vmatpush1.msra.mxu1 %v251_v24  ;;  %v389_v51 = vld [vmem:[#allocation8 + $0xf8] sm:$0xff]  ;;  %v388_v53 = vld [vmem:[#allocation8 + $0xf0] sm:$0xff]  ;;  %v387_v55 = vld [vmem:[#allocation8 + $0xe8] sm:$0xff] }
  0x66   :  { %914 = vmatpush3.msra.mxu0 %v140_v19  ;;  %291 = vmatprep.subr.mxu1 %v250_v26  ;;  %v373_v52 = vld [vmem:[#allocation8 + $0x78] sm:$0xff]  ;;  %v372_v54 = vld [vmem:[#allocation8 + $0x70] sm:$0xff]  ;;  %v371_v56 = vld [vmem:[#allocation8 + $0x68] sm:$0xff]  ;;  %v267_v26 = vlaneseq }
  0x67   :  { %915 = vmatprep.subr.mxu0 %v139_v22  ;;  %292 = vmatpush1.msra.mxu1 %v249_v27  ;;  %v386_v57 = vld [vmem:[#allocation8 + $0xe0] sm:$0xff]  ;;  %v385_v59 = vld [vmem:[#allocation8 + $0xd8] sm:$0xff]  ;;  %v384_v61 = vld [vmem:[#allocation8 + $0xd0] sm:$0xff] }
  0x68   :  { %916 = vmatpush3.msra.mxu0 %v139_v22  ;;  %293 = vmatprep.subr.mxu1 %v248_v29  ;;  %v370_v58 = vld [vmem:[#allocation8 + $0x60] sm:$0xff]  ;;  %v369_v60 = vld [vmem:[#allocation8 + $0x58] sm:$0xff]  ;;  %v368_v62 = vld [vmem:[#allocation8 + $0x50] sm:$0xff]  ;;  %v268_v27 = vshrl.u32 %v267_v26, 7 }
  0x69   :  { %917 = vmatprep.subr.mxu0 %v138_v25  ;;  %294 = vmatpush1.msra.mxu1 %v247_v30  ;;  %v383_v63 = vld [vmem:[#allocation8 + $0xc8] sm:$0xff]  ;;  %v382_v1 = vld [vmem:[#allocation8 + $0xc0] sm:$0xff]  ;;  %v381_v3 = vld [vmem:[#allocation8 + $0xb8] sm:$0xff] }
  0x6a   :  { %918 = vmatpush3.msra.mxu0 %v138_v25  ;;  %295 = vmatprep.subr.mxu1 %v246_v32  ;;  %v367_v0 = vld [vmem:[#allocation8 + $0x48] sm:$0xff]  ;;  %v366_v2 = vld [vmem:[#allocation8 + $0x40] sm:$0xff]  ;;  %v365_v4 = vld [vmem:[#allocation8 + $0x38] sm:$0xff]  ;;  %v273_v30 = vsub.s32 1, %v268_v27 }
  0x6b   :  { %919 = vmatprep.subr.mxu0 %v137_v28  ;;  %296 = vmatpush1.msra.mxu1 %v245_v33  ;;  %v380_v5 = vld [vmem:[#allocation8 + $0xb0] sm:$0xff]  ;;  %v379_v7 = vld [vmem:[#allocation8 + $0xa8] sm:$0xff]  ;;  %v378_v9 = vld [vmem:[#allocation8 + $0xa0] sm:$0xff] }
  0x6c   :  { %920 = vmatpush3.msra.mxu0 %v137_v28  ;;  %297 = vmatprep.subr.mxu1 %v244_v35  ;;  %v364_v6 = vld [vmem:[#allocation8 + $0x30] sm:$0xff]  ;;  %v363_v8 = vld [vmem:[#allocation8 + $0x28] sm:$0xff]  ;;  %v362_v10 = vld [vmem:[#allocation8 + $0x20] sm:$0xff]  ;;  %v269_v28 = vsub.s32 0, %v268_v27 }
  0x6d   :  { %921 = vmatprep.subr.mxu0 %v136_v31  ;;  %298 = vmatpush1.msra.mxu1 %v243_v36  ;;  %v785_v12 = vld [vmem:[%s1360_s2] ss:$0 sm:$0xff]  ;;  %v377_v18 = vld [vmem:[#allocation8 + $0x98] sm:$0xff]  ;;  %v375_v22 = vld [vmem:[#allocation8 + $0x88] sm:$0xff] }
  0x6e   :  { %922 = vmatpush3.msra.mxu0 %v136_v31  ;;  %299 = vmatprep.subr.mxu1 %v242_v38  ;;  %v361_v19 = vld [vmem:[#allocation8 + $0x18] sm:$0xff]  ;;  %v376_v20 = vld [vmem:[#allocation8 + $0x90] sm:$0xff]  ;;  %v359_v23 = vld [vmem:[#allocation8 + $0x8] sm:$0xff] }
  0x6f   :  { %923 = vmatprep.subr.mxu0 %v135_v34  ;;  %300 = vmatpush1.msra.mxu1 %v241_v39  ;;  %v360_v21 = vld [vmem:[#allocation8 + $0x10] sm:$0xff]  ;;  %v374_v24 = vld [vmem:[#allocation8 + $0x80] sm:$0xff]  ;;  %v580_v26 = vld [vmem:[#allocation11 + $0x18] sm:$0xff] }
  0x70   :  { %924 = vmatpush3.msra.mxu0 %v135_v34  ;;  %301 = vmatprep.subr.mxu1 %v240_v41  ;;  %v358_v25 = vld [vmem:[#allocation8] sm:$0xff]  ;;  %v265_v29 = vld [vmem:[%s1362_s4] sm:$0x3] }
  0x71   :  { %925 = vmatprep.subr.mxu0 %v134_v37  ;;  %302 = vmatpush1.msra.mxu1 %v239_v43  ;;  %v270_v31 = vrot.slane %v265_v29, %v269_v28  ;;  %v274_v32 = vrot.slane %v265_v29, %v273_v30  ;;  %v579_v27 = vld [vmem:[#allocation11 + $0x10] sm:$0xff]  ;;  %v578_v28 = vld [vmem:[#allocation11 + $0x8] sm:$0xff]  ;;  %v577_v29 = vld [vmem:[#allocation11] sm:$0xff] }
  0x72   :  { %926 = vmatpush3.msra.mxu0 %v134_v37  ;;  %303 = vmatprep.subr.mxu1 %v238_v44  ;;  %v687_v30 = vld [vmem:[#allocation13 + $0x78] sm:$0xff] }
  0x73   :  { %927 = vmatprep.subr.mxu0 %v133_v40  ;;  %304 = vmatpush1.msra.mxu1 %v237_v45  ;;  %v497_v45 = vld [vmem:[#allocation10 + $0x78] sm:$0xff] }
  0x74   :  { %928 = vmatpush3.msra.mxu0 %v133_v40  ;;  %305 = vmatprep.subr.mxu1 %v236_v46  ;;  %v496_v46 = vld [vmem:[#allocation10 + $0x70] sm:$0xff] }
  0x75   :  { %930 = vmatmul.mubr.f32.vlgmr.msra.gmra.mxu0 %v132_v42  ;;  %306 = vmatpush1.msra.mxu1 %v235_v47  ;;  %v495_v47 = vld [vmem:[#allocation10 + $0x68] sm:$0xff] }
  0x76   :  { %307 = vmatprep.subr.mxu1 %v234_v48  ;;  %805 = vmatprep.subr.mxu0 %v389_v51  ;;  %v494_v48 = vld [vmem:[#allocation10 + $0x60] sm:$0xff] }
  0x77   :  { %308 = vmatpush1.msra.mxu1 %v233_v49  ;;  %806 = vmatpush3.msra.mxu0 %v373_v52  ;;  %v493_v49 = vld [vmem:[#allocation10 + $0x58] sm:$0xff]  ;;  %v786_v52 = vld [vmem:[%s1364_s6] ss:$0 sm:$0xff]  ;;  %s1240_s6 = smov [#allocation14]  }
  0x78   :  { %807 = vmatprep.subr.mxu0 %v388_v53  ;;  %932 = vmatprep.subr.mxu1 %v497_v45  ;;  %s770_s30 = sshll.u32 %s1240_s6, 4  ;;  %s771_s30 = int_to_ptr.vmem [resolvable:$true] %s770_s30 }
  0x79   :  { %808 = vmatpush3.msra.mxu0 %v372_v54  ;;  %s1198_s5 = scalar_lea.vmem %s771_s30, 256  ;;  %p1203_p8 = scmp.lt.s32.totalorder %s771_s30, %s771_s30 }
  0x7a   :  { %809 = vmatprep.subr.mxu0 %v387_v55  ;;  %p1199_p7 = scmp.ne.s32.totalorder %s771_s30, %s1198_s5  ;;  %p1204_p9 = scmp.lt.s32.totalorder %s1198_s5, %s1198_s5 }
  0x7b   :  { %810 = vmatpush3.msra.mxu0 %v371_v56 }
  0x7c   :  { %811 = vmatprep.subr.mxu0 %v386_v57  ;;  %p1205_p10 = por %p1204_p9, %p1203_p8 }
  0x7d   :  { %812 = vmatpush3.msra.mxu0 %v370_v58 }
  0x7e   :  { %813 = vmatprep.subr.mxu0 %v385_v59  ;;  %v492_v59 = vld [vmem:[#allocation10 + $0x50] sm:$0xff]  ;;  %p1206_p11 = pnand %p1205_p10, %p1199_p7 }
  0x7f   :  { %814 = vmatpush3.msra.mxu0 %v369_v60  ;;  %v491_v60 = vld [vmem:[#allocation10 + $0x48] sm:$0xff] }
  0x80   :  { %815 = vmatprep.subr.mxu0 %v384_v61  ;;  %v490_v61 = vld [vmem:[#allocation10 + $0x40] sm:$0xff] }
  0x81   :  { %816 = vmatpush3.msra.mxu0 %v368_v62  ;;  %v489_v62 = vld [vmem:[#allocation10 + $0x38] sm:$0xff] }
  0x82   :  { %817 = vmatprep.subr.mxu0 %v383_v63  ;;  %v488_v63 = vld [vmem:[#allocation10 + $0x30] sm:$0xff] }
  0x83   :  { %818 = vmatpush3.msra.mxu0 %v367_v0  ;;  %v487_v0 = vld [vmem:[#allocation10 + $0x28] sm:$0xff] }
  0x84   :  { %819 = vmatprep.subr.mxu0 %v382_v1  ;;  %v486_v1 = vld [vmem:[#allocation10 + $0x20] sm:$0xff] }
  0x85   :  { %820 = vmatpush3.msra.mxu0 %v366_v2  ;;  %v485_v2 = vld [vmem:[#allocation10 + $0x18] sm:$0xff] }
  0x86   :  { %821 = vmatprep.subr.mxu0 %v381_v3  ;;  %v484_v3 = vld [vmem:[#allocation10 + $0x10] sm:$0xff] }
  0x87   :  { %822 = vmatpush3.msra.mxu0 %v365_v4  ;;  %v483_v4 = vld [vmem:[#allocation10 + $0x8] sm:$0xff] }
  0x88   :  { %823 = vmatprep.subr.mxu0 %v380_v5  ;;  %v482_v5 = vld [vmem:[#allocation10] sm:$0xff] }
  0x89   :  { %824 = vmatpush3.msra.mxu0 %v364_v6  ;;  %v592_v6 = vld [vmem:[#allocation11 + $0x78] sm:$0xff] }
  0x8a   :  { %825 = vmatprep.subr.mxu0 %v379_v7  ;;  %v591_v7 = vld [vmem:[#allocation11 + $0x70] sm:$0xff] }
  0x8b   :  { %826 = vmatpush3.msra.mxu0 %v363_v8  ;;  %v590_v8 = vld [vmem:[#allocation11 + $0x68] sm:$0xff] }
  0x8c   :  { %827 = vmatprep.subr.mxu0 %v378_v9  ;;  %v589_v9 = vld [vmem:[#allocation11 + $0x60] sm:$0xff] }
  0x8d   :  { %828 = vmatpush3.msra.mxu0 %v362_v10  ;;  %v588_v10 = vld [vmem:[#allocation11 + $0x58] sm:$0xff] }
  0x8e   :  { %829 = vmatprep.subr.mxu0 %v377_v18 }
  0x8f   :  { %830 = vmatpush3.msra.mxu0 %v361_v19 }
  0x90   :  { %831 = vmatprep.subr.mxu0 %v376_v20  ;;  %v586_v20 = vld [vmem:[#allocation11 + $0x48] sm:$0xff] }
  0x91   :  { %832 = vmatpush3.msra.mxu0 %v360_v21  ;;  %v585_v21 = vld [vmem:[#allocation11 + $0x40] sm:$0xff] }
  0x92   :  { %833 = vmatprep.subr.mxu0 %v375_v22  ;;  %v584_v22 = vld [vmem:[#allocation11 + $0x38] sm:$0xff] }
  0x93   :  { %834 = vmatpush3.msra.mxu0 %v359_v23  ;;  %v583_v23 = vld [vmem:[#allocation11 + $0x30] sm:$0xff] }
  0x94   :  { %835 = vmatprep.subr.mxu0 %v374_v24  ;;  %v582_v24 = vld [vmem:[#allocation11 + $0x28] sm:$0xff] }
  0x95   :  { %836 = vmatpush3.msra.mxu0 %v358_v25  ;;  %v581_v25 = vld [vmem:[#allocation11 + $0x20] sm:$0xff] }
  0x96   :  { %967 = vmatprep.subr.mxu0 %v592_v6 }
 0x135   :  { %v931_v11 = vpop.f32.mrf.mxu0 }
 0x136   :  { %v228_v15 = vadd.f32 %v931_v11, %v785_v12  ;;  %v587_v11 = vld [vmem:[#allocation11 + $0x50] sm:$0xff] }
 0x137   :  { %v222_v13 = vpop.f32.mrf.mxu0 }
 0x138   :  { %v223_v14 = vadd.f32 %v785_v12, %v222_v13  ;;  %v232_v17 = vmax.f32 %v228_v15, 0.0 }
 0x13a   :  { %v231_v16 = vmax.f32 %v223_v14, 0.0 }
 0x13c   :  { %342 = vmatmul.mubr.f32.vlgmr.msra.gmra.mxu1 %v231_v16 }
 0x13d   :  { %347 = vmatprep.mubr.f32.mxu1 %v1239_v50  ;;  %933 = vmatpush3.msra.mxu1 %v497_v45 }
 0x13e   :  { %934 = vmatprep.subr.mxu1 %v496_v46 }
 0x13f   :  { %935 = vmatpush3.msra.mxu1 %v496_v46 }
 0x140   :  { %348 = vmatmul.mubr.f32.gmra.mxu1 %v232_v17  ;;  %936 = vmatprep.subr.mxu1 %v495_v47 }
 0x141   :  { %937 = vmatpush3.msra.mxu1 %v495_v47 }
 0x142   :  { %938 = vmatprep.subr.mxu1 %v494_v48 }
 0x143   :  { %939 = vmatpush3.msra.mxu1 %v494_v48  ;;  %v675_v48 = vld [vmem:[#allocation13 + $0x18] sm:$0xff] }
 0x144   :  { %940 = vmatprep.subr.mxu1 %v493_v49 }
 0x145   :  { %941 = vmatpush3.msra.mxu1 %v493_v49  ;;  %v674_v49 = vld [vmem:[#allocation13 + $0x10] sm:$0xff] }
 0x146   :  { %942 = vmatprep.subr.mxu1 %v492_v59 }
 0x147   :  { %943 = vmatpush3.msra.mxu1 %v492_v59 }
 0x148   :  { %944 = vmatprep.subr.mxu1 %v491_v60 }
 0x149   :  { %945 = vmatpush3.msra.mxu1 %v491_v60 }
 0x14a   :  { %946 = vmatprep.subr.mxu1 %v490_v61 }
 0x14b   :  { %947 = vmatpush3.msra.mxu1 %v490_v61 }
 0x14c   :  { %948 = vmatprep.subr.mxu1 %v489_v62 }
 0x14d   :  { %949 = vmatpush3.msra.mxu1 %v489_v62 }
 0x14e   :  { %950 = vmatprep.subr.mxu1 %v488_v63 }
 0x14f   :  { %951 = vmatpush3.msra.mxu1 %v488_v63 }
 0x150   :  { %952 = vmatprep.subr.mxu1 %v487_v0 }
 0x151   :  { %953 = vmatpush3.msra.mxu1 %v487_v0 }
 0x152   :  { %954 = vmatprep.subr.mxu1 %v486_v1 }
 0x153   :  { %955 = vmatpush3.msra.mxu1 %v486_v1 }
 0x154   :  { %956 = vmatprep.subr.mxu1 %v485_v2 }
 0x155   :  { %957 = vmatpush3.msra.mxu1 %v485_v2 }
 0x156   :  { %958 = vmatprep.subr.mxu1 %v484_v3 }
 0x157   :  { %959 = vmatpush3.msra.mxu1 %v484_v3 }
 0x158   :  { %960 = vmatprep.subr.mxu1 %v483_v4 }
 0x159   :  { %961 = vmatpush3.msra.mxu1 %v483_v4 }
 0x15a   :  { %962 = vmatprep.subr.mxu1 %v482_v5 }
 0x15b   :  { %963 = vmatpush3.msra.mxu1 %v482_v5 }
 0x15c   :  { %1002 = vmatprep.subr.mxu1 %v687_v30 }
 0x1fc   :  { %v343_v33 = vpop.f32.mrf.mxu1 }
 0x1fd   :  { %v344_v34 = vadd.f32 %v343_v33, %v270_v31  ;;  %v684_v33 = vld [vmem:[#allocation13 + $0x60] sm:$0xff] }
 0x1fe   :  { %v345_v35 = vpop.f32.mrf.mxu1 }
 0x1ff   :  { %v346_v36 = vadd.f32 %v345_v35, %v274_v32  ;;  %v354_v39 = vmax.f32 %v344_v34, 0.0  ;;  %v683_v34 = vld [vmem:[#allocation13 + $0x58] sm:$0xff]  ;;  %v682_v35 = vld [vmem:[#allocation13 + $0x50] sm:$0xff] }
 0x200   :  { %v349_v37 = vpop.f32.mrf.mxu1 }
 0x201   :  { %v355_v38 = vmax.f32 %v346_v36, 0.0  ;;  %v350_v40 = vadd.f32 %v349_v37, %v270_v31  ;;  %v686_v31 = vld [vmem:[#allocation13 + $0x70] sm:$0xff]  ;;  %v681_v36 = vld [vmem:[#allocation13 + $0x48] sm:$0xff]  ;;  %v680_v37 = vld [vmem:[#allocation13 + $0x40] sm:$0xff] }
 0x202   :  { %v351_v41 = vpop.f32.mrf.mxu1 }
 0x203   :  { %v352_v42 = vadd.f32 %v351_v41, %v274_v32  ;;  %461 = vmatprep.mubr.f32.mxu0 %v355_v38  ;;  %v356_v44 = vmax.f32 %v350_v40, 0.0  ;;  %v685_v32 = vld [vmem:[#allocation13 + $0x68] sm:$0xff]  ;;  %v679_v38 = vld [vmem:[#allocation13 + $0x38] sm:$0xff]  ;;  %v676_v41 = vld [vmem:[#allocation13 + $0x20] sm:$0xff] }
 0x204   :  { %462 = vmatmul.mubr.f32.vlgmr.msra.gmra.mxu0 %v354_v39  ;;  %v678_v39 = vld [vmem:[#allocation13 + $0x30] sm:$0xff]  ;;  %v677_v40 = vld [vmem:[#allocation13 + $0x28] sm:$0xff] }
 0x205   :  { %v357_v43 = vmax.f32 %v352_v42, 0.0  ;;  %968 = vmatpush3.msra.mxu0 %v592_v6 }
 0x206   :  { %969 = vmatprep.subr.mxu0 %v591_v7 }
 0x207   :  { %466 = vmatprep.mubr.f32.mxu0 %v357_v43  ;;  %970 = vmatpush3.msra.mxu0 %v591_v7 }
 0x208   :  { %467 = vmatmul.mubr.f32.gmra.mxu0 %v356_v44  ;;  %971 = vmatprep.subr.mxu0 %v590_v8 }
 0x209   :  { %972 = vmatpush3.msra.mxu0 %v590_v8 }
 0x20a   :  { %973 = vmatprep.subr.mxu0 %v589_v9 }
 0x20b   :  { %974 = vmatpush3.msra.mxu0 %v589_v9 }
 0x20c   :  { %975 = vmatprep.subr.mxu0 %v588_v10 }
 0x20d   :  { %976 = vmatpush3.msra.mxu0 %v588_v10 }
 0x20e   :  { %977 = vmatprep.subr.mxu0 %v587_v11 }
 0x20f   :  { %978 = vmatpush3.msra.mxu0 %v587_v11 }
 0x210   :  { %979 = vmatprep.subr.mxu0 %v586_v20 }
 0x211   :  { %980 = vmatpush3.msra.mxu0 %v586_v20 }
 0x212   :  { %981 = vmatprep.subr.mxu0 %v585_v21 }
 0x213   :  { %982 = vmatpush3.msra.mxu0 %v585_v21 }
 0x214   :  { %983 = vmatprep.subr.mxu0 %v584_v22 }
 0x215   :  { %984 = vmatpush3.msra.mxu0 %v584_v22 }
 0x216   :  { %985 = vmatprep.subr.mxu0 %v583_v23 }
 0x217   :  { %986 = vmatpush3.msra.mxu0 %v583_v23 }
 0x218   :  { %987 = vmatprep.subr.mxu0 %v582_v24 }
 0x219   :  { %988 = vmatpush3.msra.mxu0 %v582_v24 }
 0x21a   :  { %989 = vmatprep.subr.mxu0 %v581_v25 }
 0x21b   :  { %990 = vmatpush3.msra.mxu0 %v581_v25 }
 0x21c   :  { %991 = vmatprep.subr.mxu0 %v580_v26 }
 0x21d   :  { %992 = vmatpush3.msra.mxu0 %v580_v26 }
 0x21e   :  { %993 = vmatprep.subr.mxu0 %v579_v27 }
 0x21f   :  { %994 = vmatpush3.msra.mxu0 %v579_v27 }
 0x220   :  { %995 = vmatprep.subr.mxu0 %v578_v28 }
 0x221   :  { %996 = vmatpush3.msra.mxu0 %v578_v28 }
 0x222   :  { %997 = vmatprep.subr.mxu0 %v577_v29 }
 0x223   :  { %998 = vmatpush3.msra.mxu0 %v577_v29 }
 0x2c4   :  { %v837_v50 = vpop.f32.mrf.mxu0 }
 0x2c6   :  { %v838_v51 = vpop.f32.mrf.mxu0 }
 0x2c7   :  { %v839_v53 = vadd.f32 %v838_v51, %v837_v50  ;;  %v673_v50 = vld [vmem:[#allocation13 + $0x8] sm:$0xff]  ;;  %v672_v51 = vld [vmem:[#allocation13] sm:$0xff] }
 0x2c8   :  { %v840_v54 = vpop.f32.mrf.mxu0 }
 0x2c9   :  { %v464_v55 = vadd.f32 %v839_v53, %v786_v52 }
 0x2ca   :  { %v841_v56 = vpop.f32.mrf.mxu0 }
 0x2cb   :  { %v842_v57 = vadd.f32 %v841_v56, %v840_v54  ;;  %472 = vmax.xlane.f32.xlu0 %v464_v55 }
 0x2cd   :  { %v469_v58 = vadd.f32 %v842_v57, %v786_v52 }
 0x2cf   :  { %474 = vmax.xlane.f32.xlu0 %v469_v58 }
 0x354   :  { %v473_v12 = vpop.xlane.xlu0 %472 }
 0x355   :  { %v476_v13 = vsub.f32 %v464_v55, %v473_v12 }
 0x357   :  { %v478_v14 = vmul.f32 1.442695, %v476_v13 }
 0x358   :  { %v475_v15 = vpop.xlane.xlu0 %474 }
 0x359   :  { %1050 = vpow2.f32 %v478_v14  ;;  %v477_v16 = vsub.f32 %v469_v58, %v475_v15 }
 0x35b   :  { %v480_v17 = vmul.f32 1.442695, %v477_v16 }
 0x35d   :  { %1052 = vpow2.f32 %v480_v17 }
 0x366   :  { %v1344_v18 = vpop.eup %1050 }
 0x367   :  { %964 = vmatprep.mubr.f32.mxu1 %v1344_v18 }
 0x36a   :  { %v1347_v19 = vpop.eup %1052 }
 0x36b   :  { %965 = vmatmul.mubr.f32.vlgmr.msra.gmra.mxu1 %v1347_v19 }
 0x36c   :  { %1003 = vmatpush3.msra.mxu1 %v687_v30 }
 0x36d   :  { %1004 = vmatprep.subr.mxu1 %v686_v31 }
 0x36e   :  { %1005 = vmatpush3.msra.mxu1 %v686_v31 }
 0x36f   :  { %1006 = vmatprep.subr.mxu1 %v685_v32 }
 0x370   :  { %1007 = vmatpush3.msra.mxu1 %v685_v32 }
 0x371   :  { %1008 = vmatprep.subr.mxu1 %v684_v33 }
 0x372   :  { %1009 = vmatpush3.msra.mxu1 %v684_v33 }
 0x373   :  { %1010 = vmatprep.subr.mxu1 %v683_v34 }
 0x374   :  { %1011 = vmatpush3.msra.mxu1 %v683_v34 }
 0x375   :  { %1012 = vmatprep.subr.mxu1 %v682_v35 }
 0x376   :  { %1013 = vmatpush3.msra.mxu1 %v682_v35 }
 0x377   :  { %1014 = vmatprep.subr.mxu1 %v681_v36 }
 0x378   :  { %1015 = vmatpush3.msra.mxu1 %v681_v36 }
 0x379   :  { %1016 = vmatprep.subr.mxu1 %v680_v37 }
 0x37a   :  { %1017 = vmatpush3.msra.mxu1 %v680_v37 }
 0x37b   :  { %1018 = vmatprep.subr.mxu1 %v679_v38 }
 0x37c   :  { %1019 = vmatpush3.msra.mxu1 %v679_v38 }
 0x37d   :  { %1020 = vmatprep.subr.mxu1 %v678_v39 }
 0x37e   :  { %1021 = vmatpush3.msra.mxu1 %v678_v39 }
 0x37f   :  { %1022 = vmatprep.subr.mxu1 %v677_v40 }
 0x380   :  { %1023 = vmatpush3.msra.mxu1 %v677_v40 }
 0x381   :  { %1024 = vmatprep.subr.mxu1 %v676_v41 }
 0x382   :  { %1025 = vmatpush3.msra.mxu1 %v676_v41 }
 0x383   :  { %1026 = vmatprep.subr.mxu1 %v675_v48 }
 0x384   :  { %1027 = vmatpush3.msra.mxu1 %v675_v48 }
 0x385   :  { %1028 = vmatprep.subr.mxu1 %v674_v49 }
 0x386   :  { %1029 = vmatpush3.msra.mxu1 %v674_v49 }
 0x387   :  { %1030 = vmatprep.subr.mxu1 %v673_v50 }
 0x388   :  { %1031 = vmatpush3.msra.mxu1 %v673_v50 }
 0x389   :  { %1032 = vmatprep.subr.mxu1 %v672_v51 }
 0x38a   :  { %1033 = vmatpush3.msra.mxu1 %v672_v51 }
 0x42b   :  { %v966_v42 = vpop.f32.mrf.mxu1 }
 0x42c   :  { %v574_v43 = vmax.f32 %v966_v42, 1e-12 }
 0x42d   :  { %v564_v44 = vpop.f32.mrf.mxu1 }
 0x42e   :  { %v573_v45 = vmax.f32 %v564_v44, 1e-12 }
 0x430   :  { %1054 = vrcp.f32 %v573_v45 }
 0x431   :  { %1056 = vrcp.f32 %v574_v43 }
 0x43d   :  { %v1055_v46 = vpop.eup %1054 }
 0x43e   :  { %v1057_v47 = vpop.eup %1056  ;;  %999 = vmatprep.mubr.f32.mxu0 %v1055_v46 }
 0x43f   :  { %1000 = vmatmul.mubr.f32.vlgmr.msra.gmra.mxu0 %v1057_v47 }
 0x4ff   :  { %v1001_v52 = vpop.f32.mrf.mxu0 }
 0x500   :  { %v669_v53 = vmul.f32 %v1347_v19, %v1001_v52 }
 0x501   :  { %v659_v54 = vpop.f32.mrf.mxu0 }
 0x502   :  { %v668_v55 = vmul.f32 %v1344_v18, %v659_v54  ;;  %v671_v57 = vmax.f32 %v669_v53, 0.001 }
 0x504   :  { %v670_v56 = vmax.f32 %v668_v55, 0.001 }
 0x506   :  { %1034 = vmatprep.mubr.f32.mxu1 %v670_v56 }
 0x507   :  { %1035 = vmatmul.mubr.f32.vlgmr.msra.gmra.mxu1 %v671_v57 }
 0x5c7   :  { %v1036_v58 = vpop.f32.mrf.mxu1 }
 0x5c8   :  { %764 = vst [vmem:[#allocation14 + $0x8] sm:$0xff] %v1036_v58 }
 0x5c9   :  { %v754_v59 = vpop.f32.mrf.mxu1 }
 0x5ca   :  { %763 = vst [vmem:[#allocation14] sm:$0xff] %v754_v59 }
 0x5cb   :  { %1209 = shalt.err (!%p1206_p11)
}
 0x5cc   :  { %776 = dma.vmem_to_hbm [thread:$0]  %s771_s30, 256, %s1368_s10, [#allocation4], %s1230_s18, %s1230_s18, %s1231_s19  }
 0x5cd   :  { %1226 = dma.done.wait [#allocation4], 256  }
 0x5ce   :  { %1227 = vsyncadd [#allocation4], 4294967040 }
 0x5cf   :  { %780 = vsyncpa [#allocation3], 1 }
 0x5d0   :  { %781 = vsyncpa [#allocation6], 1 }
 0x5d1   :  { %782 = vsyncpa [#allocation9], 1 }
 0x5d2   :  { %783 = vsyncpa [#allocation12], 1 }
 0x5d3   :  { %784 = vsyncpa [#allocation4], 1 }

</bundles_post_ra>
